<compile_context>
chip_gen: v7x
topology: tpu7x:2x2x1
jax: 0.10.0
libtpu: 0.0.40
codegen_flags: <defaults>
</compile_context>

<pallas_src>
import functools

import jax
import jax.numpy as jnp
from jax.experimental import pallas as pl
from jax.experimental.pallas import tpu as pltpu


def cheb_polynomial(L_tilde, K):
    """Chebyshev recurrence: T_0 = I, T_1 = L_tilde, T_k = 2*L_tilde@T_{k-1} - T_{k-2}."""
    N = L_tilde.shape[0]
    polys = [jnp.eye(N, dtype=L_tilde.dtype)]
    if K > 1:
        polys.append(L_tilde)
    for i in range(2, K):
        polys.append(2.0 * (L_tilde @ polys[i - 1]) - polys[i - 2])
    return jnp.stack(polys[:K], axis=0)  # (K, N, N)


def _round_up(x, m):
    return (x + m - 1) // m * m


def _pick_row_tile(Np, K, max_tile_bytes=4 * 1024 * 1024):
    """Largest row tile in {512,256,128} dividing Np whose (TN, K*Np) bf16 slab fits the budget.

    The 4 MiB single-buffer budget keeps 2x pipeline buffers + temps comfortably inside v7x's
    64 MiB VMEM at production N (e.g. N=2048, K=3 -> TN=256, ~6 MiB of double-buffered slab)."""
    for tn in (512, 256, 128):
        if Np % tn == 0 and tn * K * Np * 2 <= max_tile_bytes:
            return tn
    return 128 if Np % 128 == 0 else Np


def build_gcn_constants(L_tilde, theta, weights, biases, order_K):
    """Host-side glue. Compute ONCE per model and cache across forward calls.

    Returns:
      t_slab:       (Np, K*Np)   bf16  [T_0^T | ... | T_{K-1}^T], N zero-padded to Np (mult of 128)
      theta_folded: (K, Din, Dp) bf16  Theta_k @ W (dense layer folded in), lane-padded to Dp
      bias_pad:     (1, Dp)      f32
    """
    K = order_K
    N = L_tilde.shape[0]
    Dout = theta.shape[-1]
    Np = _round_up(N, 128)
    Dp = _round_up(Dout, 128)

    T = cheb_polynomial(L_tilde.astype(jnp.float32), K)            # (K, N, N), f32 recurrence
    Tt = jnp.transpose(T, (0, 2, 1))                               # T_k^T
    Tt = jnp.pad(Tt, ((0, 0), (0, Np - N), (0, Np - N)))           # zero-pad rows & cols to Np
    t_slab = jnp.concatenate([Tt[k] for k in range(K)], axis=1)    # (Np, K*Np)
    t_slab = t_slab.astype(jnp.bfloat16)

    theta_folded = jnp.einsum('kio,op->kip',
                              theta.astype(jnp.float32),
                              weights.astype(jnp.float32))         # exact fold of the dense layer
    theta_folded = jnp.pad(theta_folded,
                           ((0, 0), (0, 0), (0, Dp - Dout))).astype(jnp.bfloat16)
    bias_pad = jnp.pad(biases.astype(jnp.float32), (0, Dp - Dout)).reshape(1, Dp)
    return t_slab, theta_folded, bias_pad


def gcn_kernel(x_ref, tslab_ref, theta_ref, b_ref, o_ref, *, vpu_y):
    # x_ref:     (1, Np, Din)  input dtype (cast in-kernel -> no separate HBM cast pass)
    # tslab_ref: (TN, K*Np)    bf16   rows [i*TN,(i+1)*TN) of [T_0^T|...|T_{K-1}^T]; VMEM-resident
    #                                 across the inner (batch) grid axis.
    # theta_ref: (K, Din, Dp)  bf16   Theta_k @ W, zero-padded to Dp lanes
    # b_ref:     (1, Dp)       f32
    # o_ref:     (1, TN, Dp)
    K, Din, Dp = theta_ref.shape
    Np = x_ref.shape[1]
    TN = o_ref.shape[1]
    x = x_ref[0].astype(jnp.bfloat16)                              # (Np, Din)

    acc = jnp.zeros((TN, Dp), jnp.float32)
    for k in range(K):
        if vpu_y:
            # Tiny Din-deep contraction as broadcast-FMAs on the VPU: overlaps the MXU
            # contraction below and avoids wasting shallow MXU pushes.
            theta_k = theta_ref[k].astype(jnp.float32)             # (Din, Dp)
            yk = x[:, 0:1].astype(jnp.float32) * theta_k[0:1, :]
            for d in range(1, Din):
                yk = yk + x[:, d:d + 1].astype(jnp.float32) * theta_k[d:d + 1, :]
            y_k = yk.astype(jnp.bfloat16)                          # (Np, Dp)
        else:
            y_k = jnp.dot(x, theta_ref[k],
                          preferred_element_type=jnp.float32).astype(jnp.bfloat16)
        # Accumulate T_k^T(row tile) @ Y_k directly -- no (K*Np, Dp) f32 concat temp.
        acc = acc + jnp.dot(tslab_ref[:, k * Np:(k + 1) * Np], y_k,
                            preferred_element_type=jnp.float32)    # (TN, Dp) f32

    o_ref[0] = jnp.maximum(acc + b_ref[...], 0.0).astype(o_ref.dtype)   # bias + ReLU


def gcn_forward(x, t_slab, theta_folded, bias_pad, dim_out):
    """x: (B, N, Din). Returns (B, N, dim_out), matching the PyTorch module."""
    B, N, Din = x.shape
    Np = t_slab.shape[0]
    K, _, Dp = theta_folded.shape
    TN = _pick_row_tile(Np, K)
    num_row_tiles = Np // TN

    if Np != N:
        # Tiny (B*N*Din) zero-row pad; padded rows contribute nothing to the contraction.
        x = jnp.pad(x, ((0, 0), (0, Np - N), (0, 0)))

    in_bytes = jnp.dtype(x.dtype).itemsize
    # Rough per-step VMEM working set (double-buffered pipelined blocks + in-kernel temps).
    work = (2 * TN * K * Np * 2            # t_slab tile (bf16, x2 buffers)
            + 2 * Np * Din * in_bytes      # x block
            + 2 * K * Din * Dp * 2         # theta
            + 2 * Dp * 4                   # bias
            + 2 * TN * Dp * in_bytes       # out tile
            + Np * Dp * 6                  # y_k temp (f32 + bf16 copy)
            + TN * Dp * 4)                 # acc
    # Cap at 56 MiB so the request is valid on v7x (64 MiB VMEM/TC) as well as v5e/v6e.
    vmem_limit = int(min(max(2 * work, 32 << 20), 56 << 20))

    kernel = functools.partial(gcn_kernel, vpu_y=(Din <= 8))

    out_padded = pl.pallas_call(
        kernel,
        out_shape=jax.ShapeDtypeStruct((B, Np, Dp), x.dtype),
        grid_spec=pltpu.PrefetchScalarGridSpec(
            num_scalar_prefetch=0,
            # Batch is the INNERMOST grid axis: the t_slab block index (i, 0) is constant across
            # it, so Pallas skips the re-DMA and t_slab is streamed from HBM exactly once.
            grid=(num_row_tiles, B),
            in_specs=[
                pl.BlockSpec((1, Np, Din), lambda i, b: (b, 0, 0)),
                pl.BlockSpec((TN, K * Np), lambda i, b: (i, 0)),
                pl.BlockSpec((K, Din, Dp), lambda i, b: (0, 0, 0)),
                pl.BlockSpec((1, Dp), lambda i, b: (0, 0)),
            ],
            out_specs=pl.BlockSpec((1, TN, Dp), lambda i, b: (b, i, 0)),
        ),
        compiler_params=pltpu.CompilerParams(
            dimension_semantics=("parallel", "parallel"),
            vmem_limit_bytes=vmem_limit,
        ),
    )(x, t_slab, theta_folded, bias_pad)

    # TODO(synk): if the consumer accepts the padded (Np, Dp) layout (or bf16), fuse/skip this
    # slice to avoid the extra HBM read-write pass.
    return out_padded[:, :N, :dim_out]


def gcn_reference(x, L_tilde, theta, weights, biases, order_K):
    """Pure-JAX f32 reference matching the PyTorch forward exactly."""
    T = cheb_polynomial(L_tilde, order_K)
    out = jnp.zeros((x.shape[0], x.shape[1], theta.shape[-1]), jnp.float32)
    for k in range(order_K):
        # (x^T @ T_k)^T == T_k^T @ x  (per batch), then @ Theta_k
        out = out + jnp.einsum('mn,bmd,do->bno', T[k], x, theta[k])
    out = out @ weights + biases
    return jax.nn.relu(out)


if __name__ == "__main__":
    def run_case(name, B, N, Din, Dout, K):
        key = jax.random.PRNGKey(0)
        kx, kl, kth, kw, kb = jax.random.split(key, 5)

        x = jax.random.normal(kx, (B, N, Din), dtype=jnp.float32)

        # Deterministic symmetric "scaled Laplacian"-like matrix as L_tilde.
        A = jax.random.normal(kl, (N, N), dtype=jnp.float32)
        L_tilde = 0.5 * (A + A.T) / N

        theta = 0.1 * jax.random.normal(kth, (K, Din, Dout), dtype=jnp.float32)
        weights = 0.1 * jax.random.normal(kw, (Dout, Dout), dtype=jnp.float32)
        biases = 0.1 * jax.random.normal(kb, (Dout,), dtype=jnp.float32)

        # Host glue: computed once per model, cacheable across forward calls.
        consts = build_gcn_constants(L_tilde, theta, weights, biases, K)

        out = gcn_forward(x, *consts, dim_out=Dout)
        out = jax.block_until_ready(out)

        ref = gcn_reference(x, L_tilde, theta, weights, biases, K)
        assert out.shape == (B, N, Dout), (name, out.shape)
        # bf16 MXU inputs vs f32 reference -> relaxed tolerance.
        assert jnp.allclose(out, ref, atol=2e-2, rtol=2e-2), name

    # Small case matching the module defaults (VPU y-path; N padded 16 -> 128; grid=(1, 2)).
    run_case("small", B=2, N=16, Din=4, Dout=32, K=3)
    # Awkward-N, multi-row-tile case (MXU y-path; N padded 300 -> 384; TN=128; grid=(3, 3)).
    run_case("tiled", B=3, N=300, Din=16, Dout=64, K=4)

    print("KERNEL_OK")
</pallas_src>

<mosaic_0001>
module attributes {stable_mosaic.version = 11 : i64} {
  func.func @gcn_kernel(%arg0: i32, %arg1: i32, %arg2: memref<1x128x4xf32, #tpu.memory_space<vmem>>, %arg3: memref<128x384xbf16, #tpu.memory_space<vmem>>, %arg4: memref<3x4x128xbf16, #tpu.memory_space<vmem>>, %arg5: memref<1x128xf32, #tpu.memory_space<vmem>>, %arg6: memref<1x128x128xf32, #tpu.memory_space<vmem>>) attributes {dimension_semantics = [#tpu.dimension_semantics<parallel>, #tpu.dimension_semantics<parallel>], iteration_bounds = array<i64: 1, 2>, scalar_prefetch = 0 : i64, scratch_operands = 0 : i64, tpu.core_type = #tpu.core_type<tc>, window_params = [{transform_indices = @transform_0, window_bounds = array<i64: 1, 128, 4>}, {transform_indices = @transform_1, window_bounds = array<i64: 128, 384>}, {pipeline_mode = #tpu.pipeline_mode<synchronous>, transform_indices = @transform_2, window_bounds = array<i64: 3, 4, 128>}, {pipeline_mode = #tpu.pipeline_mode<synchronous>, transform_indices = @transform_3, window_bounds = array<i64: 1, 128>}, {transform_indices = @transform_4, window_bounds = array<i64: 1, 128, 128>}]} {
    %c0 = arith.constant 0 : index
    %c0_0 = arith.constant 0 : index
    %c0_1 = arith.constant 0 : index
    %0 = vector.load %arg2[%c0, %c0_0, %c0_1] : memref<1x128x4xf32, #tpu.memory_space<vmem>>, vector<1x128x4xf32>
    %1 = vector.shape_cast %0 : vector<1x128x4xf32> to vector<128x4xf32>
    %2 = arith.truncf %1 : vector<128x4xf32> to vector<128x4xbf16>
    %cst = arith.constant 0.000000e+00 : f32
    %3 = vector.broadcast %cst : f32 to vector<128x128xf32>
    %c0_2 = arith.constant 0 : index
    %c0_3 = arith.constant 0 : index
    %c0_4 = arith.constant 0 : index
    %4 = vector.load %arg4[%c0_2, %c0_3, %c0_4] : memref<3x4x128xbf16, #tpu.memory_space<vmem>>, vector<1x4x128xbf16>
    %5 = vector.shape_cast %4 : vector<1x4x128xbf16> to vector<4x128xbf16>
    %6 = arith.extf %5 : vector<4x128xbf16> to vector<4x128xf32>
    %7 = vector.extract_strided_slice %2 {offsets = [0, 0], sizes = [128, 1], strides = [1, 1]} : vector<128x4xbf16> to vector<128x1xbf16>
    %8 = arith.extf %7 : vector<128x1xbf16> to vector<128x1xf32>
    %9 = vector.extract_strided_slice %6 {offsets = [0, 0], sizes = [1, 128], strides = [1, 1]} : vector<4x128xf32> to vector<1x128xf32>
    %10 = vector.broadcast %8 : vector<128x1xf32> to vector<128x128xf32>
    %11 = vector.broadcast %9 : vector<1x128xf32> to vector<128x128xf32>
    %12 = arith.mulf %10, %11 : vector<128x128xf32>
    %13 = vector.extract_strided_slice %2 {offsets = [0, 1], sizes = [128, 1], strides = [1, 1]} : vector<128x4xbf16> to vector<128x1xbf16>
    %14 = arith.extf %13 : vector<128x1xbf16> to vector<128x1xf32>
    %15 = vector.extract_strided_slice %6 {offsets = [1, 0], sizes = [1, 128], strides = [1, 1]} : vector<4x128xf32> to vector<1x128xf32>
    %16 = vector.broadcast %14 : vector<128x1xf32> to vector<128x128xf32>
    %17 = vector.broadcast %15 : vector<1x128xf32> to vector<128x128xf32>
    %18 = arith.mulf %16, %17 : vector<128x128xf32>
    %19 = arith.addf %12, %18 : vector<128x128xf32>
    %20 = vector.extract_strided_slice %2 {offsets = [0, 2], sizes = [128, 1], strides = [1, 1]} : vector<128x4xbf16> to vector<128x1xbf16>
    %21 = arith.extf %20 : vector<128x1xbf16> to vector<128x1xf32>
    %22 = vector.extract_strided_slice %6 {offsets = [2, 0], sizes = [1, 128], strides = [1, 1]} : vector<4x128xf32> to vector<1x128xf32>
    %23 = vector.broadcast %21 : vector<128x1xf32> to vector<128x128xf32>
    %24 = vector.broadcast %22 : vector<1x128xf32> to vector<128x128xf32>
    %25 = arith.mulf %23, %24 : vector<128x128xf32>
    %26 = arith.addf %19, %25 : vector<128x128xf32>
    %27 = vector.extract_strided_slice %2 {offsets = [0, 3], sizes = [128, 1], strides = [1, 1]} : vector<128x4xbf16> to vector<128x1xbf16>
    %28 = arith.extf %27 : vector<128x1xbf16> to vector<128x1xf32>
    %29 = vector.extract_strided_slice %6 {offsets = [3, 0], sizes = [1, 128], strides = [1, 1]} : vector<4x128xf32> to vector<1x128xf32>
    %30 = vector.broadcast %28 : vector<128x1xf32> to vector<128x128xf32>
    %31 = vector.broadcast %29 : vector<1x128xf32> to vector<128x128xf32>
    %32 = arith.mulf %30, %31 : vector<128x128xf32>
    %33 = arith.addf %26, %32 : vector<128x128xf32>
    %34 = arith.truncf %33 : vector<128x128xf32> to vector<128x128xbf16>
    %c0_5 = arith.constant 0 : index
    %c0_6 = arith.constant 0 : index
    %35 = vector.load %arg3[%c0_5, %c0_6] : memref<128x384xbf16, #tpu.memory_space<vmem>>, vector<128x128xbf16>
    %cst_7 = arith.constant dense<0.000000e+00> : vector<128x128xf32>
    %36 = tpu.matmul %35, %34, %cst_7 {dimension_numbers = #tpu.dot_dimension_numbers<[1], [0], [0], [1], [0, 0, 1, 1], [], []>} : vector<128x128xbf16>, vector<128x128xbf16>, vector<128x128xf32> -> vector<128x128xf32>
    %37 = arith.addf %3, %36 : vector<128x128xf32>
    %c1 = arith.constant 1 : index
    %c0_8 = arith.constant 0 : index
    %c0_9 = arith.constant 0 : index
    %38 = vector.load %arg4[%c1, %c0_8, %c0_9] : memref<3x4x128xbf16, #tpu.memory_space<vmem>>, vector<1x4x128xbf16>
    %39 = vector.shape_cast %38 : vector<1x4x128xbf16> to vector<4x128xbf16>
    %40 = arith.extf %39 : vector<4x128xbf16> to vector<4x128xf32>
    %41 = vector.extract_strided_slice %2 {offsets = [0, 0], sizes = [128, 1], strides = [1, 1]} : vector<128x4xbf16> to vector<128x1xbf16>
    %42 = arith.extf %41 : vector<128x1xbf16> to vector<128x1xf32>
    %43 = vector.extract_strided_slice %40 {offsets = [0, 0], sizes = [1, 128], strides = [1, 1]} : vector<4x128xf32> to vector<1x128xf32>
    %44 = vector.broadcast %42 : vector<128x1xf32> to vector<128x128xf32>
    %45 = vector.broadcast %43 : vector<1x128xf32> to vector<128x128xf32>
    %46 = arith.mulf %44, %45 : vector<128x128xf32>
    %47 = vector.extract_strided_slice %2 {offsets = [0, 1], sizes = [128, 1], strides = [1, 1]} : vector<128x4xbf16> to vector<128x1xbf16>
    %48 = arith.extf %47 : vector<128x1xbf16> to vector<128x1xf32>
    %49 = vector.extract_strided_slice %40 {offsets = [1, 0], sizes = [1, 128], strides = [1, 1]} : vector<4x128xf32> to vector<1x128xf32>
    %50 = vector.broadcast %48 : vector<128x1xf32> to vector<128x128xf32>
    %51 = vector.broadcast %49 : vector<1x128xf32> to vector<128x128xf32>
    %52 = arith.mulf %50, %51 : vector<128x128xf32>
    %53 = arith.addf %46, %52 : vector<128x128xf32>
    %54 = vector.extract_strided_slice %2 {offsets = [0, 2], sizes = [128, 1], strides = [1, 1]} : vector<128x4xbf16> to vector<128x1xbf16>
    %55 = arith.extf %54 : vector<128x1xbf16> to vector<128x1xf32>
    %56 = vector.extract_strided_slice %40 {offsets = [2, 0], sizes = [1, 128], strides = [1, 1]} : vector<4x128xf32> to vector<1x128xf32>
    %57 = vector.broadcast %55 : vector<128x1xf32> to vector<128x128xf32>
    %58 = vector.broadcast %56 : vector<1x128xf32> to vector<128x128xf32>
    %59 = arith.mulf %57, %58 : vector<128x128xf32>
    %60 = arith.addf %53, %59 : vector<128x128xf32>
    %61 = vector.extract_strided_slice %2 {offsets = [0, 3], sizes = [128, 1], strides = [1, 1]} : vector<128x4xbf16> to vector<128x1xbf16>
    %62 = arith.extf %61 : vector<128x1xbf16> to vector<128x1xf32>
    %63 = vector.extract_strided_slice %40 {offsets = [3, 0], sizes = [1, 128], strides = [1, 1]} : vector<4x128xf32> to vector<1x128xf32>
    %64 = vector.broadcast %62 : vector<128x1xf32> to vector<128x128xf32>
    %65 = vector.broadcast %63 : vector<1x128xf32> to vector<128x128xf32>
    %66 = arith.mulf %64, %65 : vector<128x128xf32>
    %67 = arith.addf %60, %66 : vector<128x128xf32>
    %68 = arith.truncf %67 : vector<128x128xf32> to vector<128x128xbf16>
    %c0_10 = arith.constant 0 : index
    %c128 = arith.constant 128 : index
    %69 = vector.load %arg3[%c0_10, %c128] : memref<128x384xbf16, #tpu.memory_space<vmem>>, vector<128x128xbf16>
    %cst_11 = arith.constant dense<0.000000e+00> : vector<128x128xf32>
    %70 = tpu.matmul %69, %68, %cst_11 {dimension_numbers = #tpu.dot_dimension_numbers<[1], [0], [0], [1], [0, 0, 1, 1], [], []>} : vector<128x128xbf16>, vector<128x128xbf16>, vector<128x128xf32> -> vector<128x128xf32>
    %71 = arith.addf %37, %70 : vector<128x128xf32>
    %c2 = arith.constant 2 : index
    %c0_12 = arith.constant 0 : index
    %c0_13 = arith.constant 0 : index
    %72 = vector.load %arg4[%c2, %c0_12, %c0_13] : memref<3x4x128xbf16, #tpu.memory_space<vmem>>, vector<1x4x128xbf16>
    %73 = vector.shape_cast %72 : vector<1x4x128xbf16> to vector<4x128xbf16>
    %74 = arith.extf %73 : vector<4x128xbf16> to vector<4x128xf32>
    %75 = vector.extract_strided_slice %2 {offsets = [0, 0], sizes = [128, 1], strides = [1, 1]} : vector<128x4xbf16> to vector<128x1xbf16>
    %76 = arith.extf %75 : vector<128x1xbf16> to vector<128x1xf32>
    %77 = vector.extract_strided_slice %74 {offsets = [0, 0], sizes = [1, 128], strides = [1, 1]} : vector<4x128xf32> to vector<1x128xf32>
    %78 = vector.broadcast %76 : vector<128x1xf32> to vector<128x128xf32>
    %79 = vector.broadcast %77 : vector<1x128xf32> to vector<128x128xf32>
    %80 = arith.mulf %78, %79 : vector<128x128xf32>
    %81 = vector.extract_strided_slice %2 {offsets = [0, 1], sizes = [128, 1], strides = [1, 1]} : vector<128x4xbf16> to vector<128x1xbf16>
    %82 = arith.extf %81 : vector<128x1xbf16> to vector<128x1xf32>
    %83 = vector.extract_strided_slice %74 {offsets = [1, 0], sizes = [1, 128], strides = [1, 1]} : vector<4x128xf32> to vector<1x128xf32>
    %84 = vector.broadcast %82 : vector<128x1xf32> to vector<128x128xf32>
    %85 = vector.broadcast %83 : vector<1x128xf32> to vector<128x128xf32>
    %86 = arith.mulf %84, %85 : vector<128x128xf32>
    %87 = arith.addf %80, %86 : vector<128x128xf32>
    %88 = vector.extract_strided_slice %2 {offsets = [0, 2], sizes = [128, 1], strides = [1, 1]} : vector<128x4xbf16> to vector<128x1xbf16>
    %89 = arith.extf %88 : vector<128x1xbf16> to vector<128x1xf32>
    %90 = vector.extract_strided_slice %74 {offsets = [2, 0], sizes = [1, 128], strides = [1, 1]} : vector<4x128xf32> to vector<1x128xf32>
    %91 = vector.broadcast %89 : vector<128x1xf32> to vector<128x128xf32>
    %92 = vector.broadcast %90 : vector<1x128xf32> to vector<128x128xf32>
    %93 = arith.mulf %91, %92 : vector<128x128xf32>
    %94 = arith.addf %87, %93 : vector<128x128xf32>
    %95 = vector.extract_strided_slice %2 {offsets = [0, 3], sizes = [128, 1], strides = [1, 1]} : vector<128x4xbf16> to vector<128x1xbf16>
    %96 = arith.extf %95 : vector<128x1xbf16> to vector<128x1xf32>
    %97 = vector.extract_strided_slice %74 {offsets = [3, 0], sizes = [1, 128], strides = [1, 1]} : vector<4x128xf32> to vector<1x128xf32>
    %98 = vector.broadcast %96 : vector<128x1xf32> to vector<128x128xf32>
    %99 = vector.broadcast %97 : vector<1x128xf32> to vector<128x128xf32>
    %100 = arith.mulf %98, %99 : vector<128x128xf32>
    %101 = arith.addf %94, %100 : vector<128x128xf32>
    %102 = arith.truncf %101 : vector<128x128xf32> to vector<128x128xbf16>
    %c0_14 = arith.constant 0 : index
    %c256 = arith.constant 256 : index
    %103 = vector.load %arg3[%c0_14, %c256] : memref<128x384xbf16, #tpu.memory_space<vmem>>, vector<128x128xbf16>
    %cst_15 = arith.constant dense<0.000000e+00> : vector<128x128xf32>
    %104 = tpu.matmul %103, %102, %cst_15 {dimension_numbers = #tpu.dot_dimension_numbers<[1], [0], [0], [1], [0, 0, 1, 1], [], []>} : vector<128x128xbf16>, vector<128x128xbf16>, vector<128x128xf32> -> vector<128x128xf32>
    %105 = arith.addf %71, %104 : vector<128x128xf32>
    %c0_16 = arith.constant 0 : index
    %c0_17 = arith.constant 0 : index
    %106 = vector.load %arg5[%c0_16, %c0_17] : memref<1x128xf32, #tpu.memory_space<vmem>>, vector<1x128xf32>
    %107 = vector.broadcast %106 : vector<1x128xf32> to vector<128x128xf32>
    %108 = arith.addf %105, %107 : vector<128x128xf32>
    %cst_18 = arith.constant 0.000000e+00 : f32
    %109 = vector.broadcast %cst_18 : f32 to vector<128x128xf32>
    %110 = arith.maximumf %108, %109 : vector<128x128xf32>
    %c0_19 = arith.constant 0 : index
    %c0_20 = arith.constant 0 : index
    %c0_21 = arith.constant 0 : index
    %111 = vector.load %arg6[%c0_19, %c0_20, %c0_21] : memref<1x128x128xf32, #tpu.memory_space<vmem>>, vector<1x128x128xf32>
    %112 = vector.shape_cast %111 : vector<1x128x128xf32> to vector<128x128xf32>
    %113 = vector.shape_cast %110 : vector<128x128xf32> to vector<1x128x128xf32>
    tpu.vector_store %arg6[%c0_19, %c0_20, %c0_21], %113 {strides = array<i32>} : memref<1x128x128xf32, #tpu.memory_space<vmem>>, vector<1x128x128xf32>,
    return
  }
  func.func @transform_0(%arg0: i32, %arg1: i32) -> (i32, i32, i32) {
    %c0_i32 = arith.constant 0 : i32
    %c0_i32_0 = arith.constant 0 : i32
    %c0_i32_1 = arith.constant 0 : i32
    return %arg1, %c0_i32, %c0_i32_0 : i32, i32, i32
  }
  func.func @transform_1(%arg0: i32, %arg1: i32) -> (i32, i32) {
    %c0_i32 = arith.constant 0 : i32
    %c0_i32_0 = arith.constant 0 : i32
    return %arg0, %c0_i32 : i32, i32
  }
  func.func @transform_2(%arg0: i32, %arg1: i32) -> (i32, i32, i32) {
    %c0_i32 = arith.constant 0 : i32
    %c0_i32_0 = arith.constant 0 : i32
    %c0_i32_1 = arith.constant 0 : i32
    %c0_i32_2 = arith.constant 0 : i32
    return %c0_i32, %c0_i32_0, %c0_i32_1 : i32, i32, i32
  }
  func.func @transform_3(%arg0: i32, %arg1: i32) -> (i32, i32) {
    %c0_i32 = arith.constant 0 : i32
    %c0_i32_0 = arith.constant 0 : i32
    %c0_i32_1 = arith.constant 0 : i32
    return %c0_i32, %c0_i32_0 : i32, i32
  }
  func.func @transform_4(%arg0: i32, %arg1: i32) -> (i32, i32, i32) {
    %c0_i32 = arith.constant 0 : i32
    %c0_i32_0 = arith.constant 0 : i32
    return %arg1, %arg0, %c0_i32 : i32, i32, i32
  }
}

</mosaic_0001>

<bundles_post_ra>
// kernel: tpu_custom_call.1
= control target key start
LH: loop header
LB: loop body
LE: loop exit
PB: predicated region body
PF: predicated region fallthrough
CT: control target
= control target key end

     0   :  { %9 = vsyncpa [#allocation3], 0  ;;  %s3029_s0 = inlined_call_operand.vmem [shape: f32[2,128,4], index: 0, kind: input, shape index: {}]   ;;  %s3030_s1 = inlined_call_operand.vmem [shape: bf16[128,384], index: 1, kind: input, shape index: {}]   ;;  %s3031_s2 = inlined_call_operand.vmem [shape: bf16[3,4,128], index: 2, kind: input, shape index: {}]   ;;  %s3032_s3 = inlined_call_operand.vmem [shape: f32[1,128], index: 3, kind: input, shape index: {}]   ;;  %s3033_s4 = inlined_call_operand.hbm [shape: f32[2,128,128], index: 4, kind: output, shape index: {}]  }
   0x1   :  { %11 = vsyncpa [#allocation3 + $0x1], 0  ;;  %s2243_s15 = smov 0   ;;  %s2245_s16 = smov 0  }
   0x2   :  { %s2247_s17 = smov 0   ;;  %s2249_s18 = smov 0  }
   0x3   :  { %s2251_s19 = smov 0   ;;  %s2253_s20 = smov 0  }
   0x4 LB: > { %s1623_s21 = sadd.s32 4294967295, %s2209_s20   ;;  %s1624_s22 = sadd.s32 4294967294, %s2209_s20   ;;  %s2209_s20 = sphi %s2253_s20, %s17_s20   ;;  %s2205_s19 = sphi %s2251_s19, %s3076_s19   ;;  %s2201_s18 = sphi %s2249_s18, %s3075_s18   ;;  %s2197_s17 = sphi %s2247_s17, %s3074_s17   ;;  %s2193_s16 = sphi %s2245_s16, %s3073_s16   ;;  %s2189_s15 = sphi %s2243_s15, %s3072_s15  }
   0x5   : > { %s26_s23 = sadd.s32 1, %s2205_s19  ;;  %s132_s24 = sadd.s32 1, %s2197_s17 }
   0x6   : > { %p27_p0 = scmp.ge.s32.totalorder %s26_s23, 2  ;;  %p142_p1 = scmp.ne.s32.totalorder %s2197_s17, %s2193_s16 }
   0x7   : > { %p143_p2 = scmp.eq.s32.totalorder %s1623_s21, 1  ;;  %p148_p3 = scmp.ne.s32.totalorder %s2193_s16, %s2189_s15 }
   0x8   : > { %s3078_s23 = smov (%p27_p0, %s26_s23), 0  ;;  %p149_p5 = scmp.eq.s32.totalorder %s1624_s22, 1 }
   0x9   : > { %p2283_p4 = por %p143_p2, %p142_p1  ;;  %s127_s26 = ssub.s32 %s2205_s19, %s3078_s23 }
   0xa   : > { %p1628_p6 = scmp.ge.s32.totalorder %s2209_s20, 1  ;;  %p130_p7 = scmp.eq.s32.totalorder %s127_s26, 0 }
   0xb   : > { %p2290_p8 = por %p149_p5, %p148_p3  ;;  %p191_p9 = scmp.lt.s32.totalorder %s2209_s20, 3 }
   0xc   : > { %s2296_s28 = scalar_select %p130_p7, %s2197_s17, %s132_s24  }
   0xd   : > { %p192_p10 = pnand %p1628_p6, %p191_p9 }
   0xf   : > { %195 = sbr.rel (%p192_p10) target bundleno = 550 (0x226), region = 36 }
  0x16   : > { %p223_p11 = scmp.lt.s32.totalorder %s2201_s18, 1  ;;  %v2211_v0 = vmov 2   ;;  %v2212_v1 = vmov 0   ;;  %v2213_v13 = vmov 1   ;;  %v2214_v14 = vmov 3   ;;  %s220_s14 = sand.u32 1, %s2193_s16  }
  0x17   : > { %1925 = vset.pattern.permute.xlu1 %v2211_v0  ;;  %1919 = vset.pattern.permute.xlu0 %v2212_v1  ;;  %v2107_v28 = vld [vmem:[%s3030_s1 + $0x4] ss:$12 sps:$4 sm:$0xff]   ;;  %v2108_v29 = vld [vmem:[%s3030_s1] ss:$12 sps:$4 sm:$0xff]   ;;  %v359_v30 = vlaneseq  ;;  %s1629_s24 = sshll.u32 %s220_s14, 7  ;;  %s2215_s9 = smov [#allocation2]  }
  0x18   : > { %s224_s29 = scalar_select %p223_p11, %s2201_s18, 1  ;;  %1730 = vmatprep.mubr.bf16.mxu1 %v2107_v28  ;;  %1762 = vmatprep.mubr.bf16.mxu0 %v2108_v29  ;;  %v1649_v32 = vld [vmem:[%s3031_s2 + $0x4] sm:$0x3]  ;;  %v261_v33 = vld [vmem:[%s3031_s2] sm:$0x3] }
  0x19   : > { %v360_v31 = vshrl.u32 %v359_v30, 7  ;;  %v1632_v35 = vld [vmem:[%s3031_s2 + $0x2] sm:$0x3]  ;;  %v1150_v36 = vunpack.c.l.bf16 %v1649_v32  ;;  %v262_v37 = vunpack.c.l.bf16 %v261_v33  ;;  %s2941_s26 = scalar_lea.vmem [#allocation2], %s1629_s24  ;;  %s2135_s10 = sshll.u32 %s2215_s9, 4  ;;  %s2136_s10 = int_to_ptr.vmem [resolvable:$false] %s2135_s10 }
  0x1a   : > { %s1664_s30 = sshll.u32 %s224_s29, 7  ;;  %v705_v38 = vunpack.c.l.bf16 %v1632_v35  ;;  %s1665_s29 = sshll.u32 %s2201_s18, 11 }
  0x1b   : > { %s2305_s7 = scalar_lea.vmem %s3029_s0, %s1664_s30  ;;  %v545_v34 = vsub.s32 2, %v360_v31  ;;  %v361_v39 = vsub.s32 0, %v360_v31  ;;  %v445_v41 = vsub.s32 1, %v360_v31  ;;  %v645_v44 = vsub.s32 3, %v360_v31  ;;  %s1535_s30 = sshll.u32 %s2941_s26, 4  ;;  %s2973_s30 = int_to_ptr.vmem [resolvable:$true] %s1535_s30 }
  0x1c   : > { %v237_v2 = vld [vmem:[%s2305_s7] sm:$0xff]  ;;  %v238_v3 = vld [vmem:[%s2305_s7 + $0x8] sm:$0xff]  ;;  %v239_v4 = vld [vmem:[%s2305_s7 + $0x10] sm:$0xff]  ;;  %s2971_s6 = scalar_lea.hbm %s3033_s4, %s1665_s29  ;;  %s2131_s8 = scalar_lea.vmem %s2973_s30, 2048 }
  0x1d   : > { %v240_v5 = vld [vmem:[%s2305_s7 + $0x18] sm:$0xff]  ;;  %v243_v6 = vld [vmem:[%s2305_s7 + $0x30] sm:$0xff]  ;;  %v1926_v8 = vpack.i.bf16 %v238_v3, %v237_v2  ;;  %v241_v11 = vld [vmem:[%s2305_s7 + $0x20] sm:$0xff]  ;;  %v2351_v40 = vrot.slane %v1150_v36, %v545_v34  ;;  %v2353_v49 = vrot.slane %v262_v37, %v545_v34  ;;  %v2355_v50 = vrot.slane %v705_v38, %v545_v34  ;;  %p2132_p12 = scmp.ne.s32.totalorder %s2973_s30, %s2131_s8  ;;  %s2137_s11 = scalar_lea.vmem %s2136_s10, 4096 }
  0x1e   : > { %v244_v7 = vld [vmem:[%s2305_s7 + $0x38] sm:$0xff]  ;;  %v1932_v9 = vpack.i.bf16 %v240_v5, %v239_v4  ;;  %v242_v12 = vld [vmem:[%s2305_s7 + $0x28] sm:$0xff]  ;;  %v247_v15 = vld [vmem:[%s2305_s7 + $0x50] sm:$0xff]  ;;  %v2357_v51 = vrot.slane %v262_v37, %v361_v39  ;;  %v2362_v53 = vrot.slane %v705_v38, %v361_v39  ;;  %v2364_v54 = vrot.slane %v1150_v36, %v361_v39  ;;  %p2138_p1 = scmp.lt.s32.totalorder %s2973_s30, %s2136_s10  ;;  %p2139_p2 = scmp.lt.s32.totalorder %s2137_s11, %s2131_s8 }
  0x1f   : > { %1927 = vperm.xlu1 %1925, %v1926_v8   ;;  %1921 = vperm.xlu0 %1919, %v1926_v8   ;;  %v1980_v10 = vpack.i.bf16 %v244_v7, %v243_v6  ;;  %v248_v16 = vld [vmem:[%s2305_s7 + $0x58] sm:$0xff]  ;;  %v1950_v17 = vpack.i.bf16 %v242_v12, %v241_v11  ;;  %v249_v18 = vld [vmem:[%s2305_s7 + $0x60] sm:$0xff]  ;;  %v250_v19 = vld [vmem:[%s2305_s7 + $0x68] sm:$0xff]  ;;  %v2366_v55 = vrot.slane %v262_v37, %v445_v41  ;;  %p2133_p13 = pnand %p2132_p12, %p2283_p4 }
  0x20   : > { %v2031_v20 = vpack.i.bf16 %v248_v16, %v247_v15  ;;  %v245_v21 = vld [vmem:[%s2305_s7 + $0x40] sm:$0xff]  ;;  %v246_v22 = vld [vmem:[%s2305_s7 + $0x48] sm:$0xff]  ;;  %v2054_v23 = vpack.i.bf16 %v250_v19, %v249_v18  ;;  %v251_v25 = vld [vmem:[%s2305_s7 + $0x70] sm:$0xff]  ;;  %v2371_v57 = vrot.slane %v705_v38, %v445_v41  ;;  %v2373_v58 = vrot.slane %v1150_v36, %v445_v41  ;;  %p2140_p3 = por %p2139_p2, %p2138_p1 }
  0x21   : > { %v1992_v24 = vpack.i.bf16 %v246_v22, %v245_v21  ;;  %v252_v26 = vld [vmem:[%s2305_s7 + $0x78] sm:$0xff]  ;;  %v2375_v59 = vrot.slane %v1150_v36, %v645_v44  ;;  %s2983_s7 = scalar_lea.sflag [#allocation3], %s220_s14  ;;  %p2134_p0 = pneg %p2133_p13 }
  0x22   : > { %v2078_v27 = vpack.i.bf16 %v252_v26, %v251_v25 }
  0x23   : > { %1931 = vset.pattern.permute.xlu1 %v2212_v1  ;;  %1979 = vset.pattern.permute.xlu0 %v2211_v0  ;;  %p2141_p5 = pnand %p2140_p3, %p2134_p0 }
  0x24   : > { %1933 = vperm.xlu1 %1931, %v1932_v9   ;;  %1981 = vperm.xlu0 %1979, %v1980_v10  }
  0x28   : > { %1937 = vset.pattern.permute.xlu1 %v2213_v13  ;;  %1985 = vset.pattern.permute.xlu0 %v2214_v14 }
  0x29   : > { %1939 = vperm.xlu1 %1937, %v1932_v9   ;;  %1987 = vperm.xlu0 %1985, %v1926_v8  }
  0x2d   : > { %1943 = vset.pattern.permute.xlu1 %v2211_v0  ;;  %2004 = vperm.xlu0 %1985, %v1980_v10  }
  0x2e   : > { %1945 = vperm.xlu1 %1943, %v1932_v9  }
  0x31   : > { %2008 = vset.pattern.permute.xlu0 %v2213_v13 }
  0x32   : > { %1949 = vset.pattern.permute.xlu1 %v2212_v1  ;;  %2010 = vperm.xlu0 %2008, %v1926_v8  }
  0x33   : > { %1951 = vperm.xlu1 %1949, %v1950_v17  }
  0x36   : > { %2015 = vperm.xlu0 %2008, %v1950_v17  }
  0x37   : > { %1955 = vset.pattern.permute.xlu1 %v2214_v14 }
  0x38   : > { %1957 = vperm.xlu1 %1955, %v1932_v9  }
  0x3a   : > { %2032 = vperm.xlu0 %2008, %v2031_v20  }
  0x3c   : > { %1961 = vset.pattern.permute.xlu1 %v2211_v0 }
  0x3d   : > { %1963 = vperm.xlu1 %1961, %v1950_v17  }
  0x3e   : > { %2036 = vset.pattern.permute.xlu0 %v2212_v1 }
  0x3f   : > { %2038 = vperm.xlu0 %2036, %v1980_v10  }
  0x41   : > { %1967 = vset.pattern.permute.xlu1 %v2213_v13 }
  0x42   : > { %1969 = vperm.xlu1 %1967, %v1980_v10  }
  0x43   : > { %2055 = vperm.xlu0 %2036, %v2054_v23  }
  0x46   : > { %1973 = vset.pattern.permute.xlu1 %v2214_v14 }
  0x47   : > { %1975 = vperm.xlu1 %1973, %v1950_v17   ;;  %2071 = vset.pattern.permute.xlu0 %v2211_v0 }
  0x48   : > { %2073 = vperm.xlu0 %2071, %v2054_v23  }
  0x4b   : > { %1991 = vset.pattern.permute.xlu1 %v2212_v1 }
  0x4c   : > { %1993 = vperm.xlu1 %1991, %v1992_v24   ;;  %2089 = vset.pattern.permute.xlu0 %v2214_v14 }
  0x4d   : > { %2091 = vperm.xlu0 %2089, %v2054_v23  }
  0x50   : > { %1997 = vset.pattern.permute.xlu1 %v2213_v13 }
  0x51   : > { %1999 = vperm.xlu1 %1997, %v1992_v24  }
  0x55   : > { %2019 = vset.pattern.permute.xlu1 %v2211_v0 }
  0x56   : > { %2021 = vperm.xlu1 %2019, %v1992_v24  }
  0x5a   : > { %2025 = vset.pattern.permute.xlu1 %v2212_v1 }
  0x5b   : > { %2027 = vperm.xlu1 %2025, %v2031_v20  }
  0x5f   : > { %2042 = vset.pattern.permute.xlu1 %v2214_v14 }
  0x60   : > { %2044 = vperm.xlu1 %2042, %v1992_v24  }
  0x64   : > { %2048 = vset.pattern.permute.xlu1 %v2211_v0 }
  0x65   : > { %2050 = vperm.xlu1 %2048, %v2031_v20  }
  0x69   : > { %2059 = vset.pattern.permute.xlu1 %v2213_v13 }
  0x6a   : > { %2061 = vperm.xlu1 %2059, %v2054_v23  }
  0x6e   : > { %2065 = vset.pattern.permute.xlu1 %v2214_v14 }
  0x6f   : > { %2067 = vperm.xlu1 %2065, %v2031_v20  }
  0x73   : > { %2077 = vset.pattern.permute.xlu1 %v2212_v1  ;;  %v2385_v1 = vrot.slane %v705_v38, %v645_v44 }
  0x74   : > { %2079 = vperm.xlu1 %2077, %v2078_v27  }
  0x78   : > { %2083 = vset.pattern.permute.xlu1 %v2213_v13 }
  0x79   : > { %2085 = vperm.xlu1 %2083, %v2078_v27  }
  0x7d   : > { %2095 = vset.pattern.permute.xlu1 %v2211_v0  ;;  %v2383_v0 = vrot.slane %v262_v37, %v645_v44 }
  0x7e   : > { %2097 = vperm.xlu1 %2095, %v2078_v27  }
  0x82   : > { %2101 = vset.pattern.permute.xlu1 %v2214_v14 }
  0x83   : > { %2103 = vperm.xlu1 %2101, %v2078_v27  }
  0x9e   : > { %v1928_v42 = vpop.permute.xlu1 %1927  ;;  %v1922_v43 = vpop.permute.xlu0 %1921 }
  0x9f   : > { %v1930_v45 = vunpack.i.h.bf16 %v1928_v42  ;;  %v1929_v46 = vunpack.i.l.bf16 %v1928_v42  ;;  %v1924_v47 = vunpack.i.h.bf16 %v1922_v43  ;;  %v1923_v48 = vunpack.i.l.bf16 %v1922_v43 }
  0xa1   : > { %v2360_v52 = vmul.f32 %v1930_v45, %v2351_v40  ;;  %v2369_v56 = vmul.f32 %v1929_v46, %v2351_v40  ;;  %v2378_v60 = vmul.f32 %v1924_v47, %v2364_v54  ;;  %v2381_v61 = vmul.f32 %v1923_v48, %v2364_v54 }
  0xa2   : > { %v2388_v2 = vmul.f32 %v1930_v45, %v2353_v49  ;;  %v2391_v6 = vmul.f32 %v1930_v45, %v2355_v50  ;;  %v2394_v7 = vmul.f32 %v1929_v46, %v2353_v49  ;;  %v2397_v8 = vmul.f32 %v1929_v46, %v2355_v50 }
  0xa3   : > { %v1934_v62 = vpop.permute.xlu1 %1933  ;;  %v1982_v63 = vpop.permute.xlu0 %1981  ;;  %v2400_v9 = vmul.f32 %v1924_v47, %v2357_v51  ;;  %v2403_v10 = vmul.f32 %v1924_v47, %v2362_v53  ;;  %v2406_v11 = vmul.f32 %v1923_v48, %v2357_v51  ;;  %v2410_v14 = vmul.f32 %v1923_v48, %v2362_v53 }
  0xa4   : > { %v1936_v3 = vunpack.i.h.bf16 %v1934_v62  ;;  %v1935_v4 = vunpack.i.l.bf16 %v1934_v62  ;;  %v1984_v5 = vunpack.i.h.bf16 %v1982_v63  ;;  %v1983_v13 = vunpack.i.l.bf16 %v1982_v63 }
  0xa6   : > { %v1158_v12 = vmul.f32 %v1936_v3, %v2364_v54  ;;  %v366_v15 = vmul.f32 %v1936_v3, %v2357_v51  ;;  %v713_v16 = vmul.f32 %v1936_v3, %v2362_v53  ;;  %v1157_v17 = vmul.f32 %v1935_v4, %v2364_v54 }
  0xa7   : > { %v365_v18 = vmul.f32 %v1935_v4, %v2357_v51  ;;  %v712_v19 = vmul.f32 %v1935_v4, %v2362_v53  ;;  %v2418_v20 = vmul.f32 %v1984_v5, %v2353_v49  ;;  %v2421_v21 = vmul.f32 %v1984_v5, %v2355_v50 }
  0xa8   : > { %v1940_v22 = vpop.permute.xlu1 %1939  ;;  %v1988_v23 = vpop.permute.xlu0 %1987  ;;  %v2424_v28 = vmul.f32 %v1984_v5, %v2351_v40  ;;  %v2427_v29 = vmul.f32 %v1983_v13, %v2353_v49  ;;  %v2430_v30 = vmul.f32 %v1983_v13, %v2355_v50  ;;  %v2433_v31 = vmul.f32 %v1983_v13, %v2351_v40 }
  0xa9   : > { %3036 = vst [vmem:[#allocation5_spill] sm:$0xff] %v2418_v20  ;;  %3037 = vst [vmem:[#allocation6_spill] sm:$0xff] %v2421_v21  ;;  %v1942_v24 = vunpack.i.h.bf16 %v1940_v22  ;;  %v1941_v25 = vunpack.i.l.bf16 %v1940_v22  ;;  %v1990_v26 = vunpack.i.h.bf16 %v1988_v23  ;;  %v1989_v27 = vunpack.i.l.bf16 %v1988_v23 }
  0xaa   : > { %3038 = vst [vmem:[#allocation7_spill] sm:$0xff] %v2427_v29  ;;  %3039 = vst [vmem:[#allocation8_spill] sm:$0xff] %v2430_v30 }
  0xab   : > { %3040 = vst [vmem:[#allocation9_spill] sm:$0xff] %v2433_v31  ;;  %v450_v32 = vmul.f32 %v1942_v24, %v2366_v55  ;;  %v733_v33 = vmul.f32 %v1942_v24, %v2371_v57  ;;  %v1178_v34 = vmul.f32 %v1942_v24, %v2373_v58  ;;  %v449_v35 = vmul.f32 %v1941_v25, %v2366_v55 }
  0xac   : > { %v732_v36 = vmul.f32 %v1941_v25, %v2371_v57  ;;  %v1177_v37 = vmul.f32 %v1941_v25, %v2373_v58  ;;  %v2442_v38 = vmul.f32 %v1990_v26, %v2375_v59  ;;  %v2445_v39 = vmul.f32 %v1989_v27, %v2375_v59  ;;  %v2005_v41 = vpop.permute.xlu0 %2004 }
  0xad   : > { %v2447_v42 = vadd.f32 %v449_v35, %v365_v18  ;;  %v2449_v43 = vadd.f32 %v450_v32, %v366_v15  ;;  %v2451_v44 = vadd.f32 %v733_v33, %v713_v16  ;;  %v1194_v45 = vadd.f32 %v1178_v34, %v1158_v12  ;;  %v1946_v46 = vpop.permute.xlu1 %1945 }
  0xae   : > { %3041 = vst [vmem:[#allocation10_spill] sm:$0xff] %v2442_v38  ;;  %3042 = vst [vmem:[#allocation11_spill] sm:$0xff] %v2445_v39  ;;  %v2453_v47 = vadd.f32 %v732_v36, %v712_v19  ;;  %v1193_v48 = vadd.f32 %v1177_v37, %v1157_v17  ;;  %v1948_v62 = vunpack.i.h.bf16 %v1946_v46  ;;  %v1947_v63 = vunpack.i.l.bf16 %v1946_v46 }
  0xaf   : > { %v2007_v3 = vunpack.i.h.bf16 %v2005_v41  ;;  %v2006_v4 = vunpack.i.l.bf16 %v2005_v41  ;;  %v2456_v5 = vmul.f32 %v1989_v27, %v2385_v1  ;;  %v2459_v13 = vmul.f32 %v1990_v26, %v2385_v1 }
  0xb0   : > { %v2462_v15 = vmul.f32 %v1948_v62, %v2353_v49  ;;  %v2465_v16 = vmul.f32 %v1948_v62, %v2355_v50  ;;  %v1214_v12 = vmul.f32 %v1948_v62, %v2351_v40  ;;  %v2469_v17 = vmul.f32 %v1947_v63, %v2353_v49 }
  0xb1   : > { %v2472_v18 = vmul.f32 %v1947_v63, %v2355_v50  ;;  %v1213_v19 = vmul.f32 %v1947_v63, %v2351_v40  ;;  %v2476_v22 = vmul.f32 %v2007_v3, %v2383_v0  ;;  %v2479_v23 = vmul.f32 %v2007_v3, %v2385_v1  ;;  %v2011_v24 = vpop.permute.xlu0 %2010 }
  0xb2   : > { %v1230_v25 = vadd.f32 %v1214_v12, %v1194_v45  ;;  %v2482_v32 = vmul.f32 %v2007_v3, %v2375_v59  ;;  %v2485_v33 = vmul.f32 %v2006_v4, %v2383_v0  ;;  %v2488_v34 = vmul.f32 %v2006_v4, %v2385_v1  ;;  %v1952_v35 = vpop.permute.xlu1 %1951 }
  0xb3   : > { %3043 = vst [vmem:[#allocation12_spill] sm:$0xff] %v2476_v22  ;;  %3044 = vst [vmem:[#allocation13_spill] sm:$0xff] %v2479_v23  ;;  %v1229_v36 = vadd.f32 %v1213_v19, %v1193_v48  ;;  %v2491_v37 = vmul.f32 %v2006_v4, %v2375_v59  ;;  %v2013_v41 = vunpack.i.h.bf16 %v2011_v24  ;;  %v2012_v46 = vunpack.i.l.bf16 %v2011_v24 }
  0xb4   : > { %3045 = vst [vmem:[#allocation14_spill] sm:$0xff] %v2482_v32  ;;  %3046 = vst [vmem:[#allocation15_spill] sm:$0xff] %v2485_v33  ;;  %v1954_v62 = vunpack.i.h.bf16 %v1952_v35  ;;  %v1953_v63 = vunpack.i.l.bf16 %v1952_v35  ;;  %v2494_v45 = vmul.f32 %v1989_v27, %v2383_v0  ;;  %v2497_v3 = vmul.f32 %v1990_v26, %v2383_v0 }
  0xb5   : > { %3047 = vst [vmem:[#allocation16_spill] sm:$0xff] %v2488_v34  ;;  %3048 = vst [vmem:[#allocation17_spill] sm:$0xff] %v2491_v37  ;;  %v2500_v12 = vmul.f32 %v2013_v41, %v2366_v55  ;;  %v2503_v32 = vmul.f32 %v2013_v41, %v2371_v57  ;;  %v1176_v48 = vmul.f32 %v2013_v41, %v2373_v58  ;;  %v2016_v19 = vpop.permute.xlu0 %2015 }
  0xb6   : > { %v2507_v4 = vmul.f32 %v2012_v46, %v2366_v55  ;;  %v730_v24 = vmul.f32 %v2012_v46, %v2371_v57  ;;  %v1175_v27 = vmul.f32 %v2012_v46, %v2373_v58  ;;  %v368_v35 = vmul.f32 %v1954_v62, %v2357_v51 }
  0xb7   : > { %v715_v26 = vmul.f32 %v1954_v62, %v2362_v53  ;;  %v1192_v37 = vadd.f32 %v1176_v48, %v2378_v60  ;;  %v1160_v38 = vmul.f32 %v1954_v62, %v2364_v54  ;;  %v367_v39 = vmul.f32 %v1953_v63, %v2357_v51  ;;  %v1958_v22 = vpop.permute.xlu1 %1957 }
  0xb8   : > { %v714_v41 = vmul.f32 %v1953_v63, %v2362_v53  ;;  %v1191_v33 = vadd.f32 %v1175_v27, %v2381_v61  ;;  %v1159_v20 = vmul.f32 %v1953_v63, %v2364_v54  ;;  %v2018_v29 = vunpack.i.h.bf16 %v2016_v19 }
  0xb9   : > { %v2017_v23 = vunpack.i.l.bf16 %v2016_v19  ;;  %v2520_v46 = vadd.f32 %v2360_v52, %v1192_v37  ;;  %v1960_v34 = vunpack.i.h.bf16 %v1958_v22  ;;  %v1959_v21 = vunpack.i.l.bf16 %v1958_v22 }
  0xba   : > { %v746_v60 = vadd.f32 %v730_v24, %v2410_v14  ;;  %v2524_v62 = vadd.f32 %v2369_v56, %v1191_v33  ;;  %v452_v48 = vmul.f32 %v2018_v29, %v2366_v55  ;;  %v735_v30 = vmul.f32 %v2018_v29, %v2371_v57 }
  0xbb   : > { %3049 = vst [vmem:[#allocation18_spill] sm:$0xff] %v2520_v46  ;;  %v1180_v61 = vmul.f32 %v2018_v29, %v2373_v58  ;;  %v451_v63 = vmul.f32 %v2017_v23, %v2366_v55  ;;  %v734_v19 = vmul.f32 %v2017_v23, %v2371_v57  ;;  %v1179_v52 = vmul.f32 %v2017_v23, %v2373_v58 }
  0xbc   : > { %3050 = vst [vmem:[#allocation19_spill] sm:$0xff] %v2524_v62  ;;  %v650_v37 = vmul.f32 %v1960_v34, %v2383_v0  ;;  %v2533_v22 = vadd.f32 %v452_v48, %v368_v35  ;;  %v2535_v14 = vadd.f32 %v735_v30, %v715_v26  ;;  %v805_v33 = vmul.f32 %v1960_v34, %v2385_v1  ;;  %v1964_v24 = vpop.permute.xlu1 %1963  ;;  %v2033_v30 = vpop.permute.xlu0 %2032 }
  0xbd   : > { %v1196_v56 = vadd.f32 %v1180_v61, %v1160_v38  ;;  %v2538_v27 = vadd.f32 %v451_v63, %v367_v39  ;;  %v2540_v46 = vadd.f32 %v734_v19, %v714_v41  ;;  %v1195_v29 = vadd.f32 %v1179_v52, %v1159_v20 }
  0xbe   : > { %3051 = vst [vmem:[#allocation20_spill] sm:$0xff] %v2533_v22  ;;  %v1250_v62 = vmul.f32 %v1960_v34, %v2375_v59  ;;  %v649_v31 = vmul.f32 %v1959_v21, %v2383_v0  ;;  %v804_v23 = vmul.f32 %v1959_v21, %v2385_v1  ;;  %v1249_v35 = vmul.f32 %v1959_v21, %v2375_v59 }
  0xbf   : > { %v1966_v48 = vunpack.i.h.bf16 %v1964_v24  ;;  %v1965_v38 = vunpack.i.l.bf16 %v1964_v24  ;;  %v2035_v61 = vunpack.i.h.bf16 %v2033_v30  ;;  %v2034_v22 = vunpack.i.l.bf16 %v2033_v30 }
  0xc0   : > { %v2546_v26 = vadd.f32 %v1250_v62, %v1230_v25  ;;  %v2548_v39 = vadd.f32 %v1249_v35, %v1229_v36 }
  0xc1   : > { %v2551_v41 = vmul.f32 %v1966_v48, %v2353_v49  ;;  %v2554_v20 = vmul.f32 %v1966_v48, %v2355_v50  ;;  %v1216_v34 = vmul.f32 %v1966_v48, %v2351_v40  ;;  %v2558_v63 = vmul.f32 %v1965_v38, %v2353_v49  ;;  %v1970_v36 = vpop.permute.xlu1 %1969 }
  0xc2   : > { %3052 = vst [vmem:[#allocation21_spill] sm:$0xff] %v2546_v26  ;;  %3053 = vst [vmem:[#allocation22_spill] sm:$0xff] %v2548_v39  ;;  %v2561_v21 = vmul.f32 %v1965_v38, %v2355_v50  ;;  %v1215_v25 = vmul.f32 %v1965_v38, %v2351_v40  ;;  %v2565_v62 = vmul.f32 %v2035_v61, %v2366_v55 }
  0xc3   : > { %v2567_v19 = vadd.f32 %v1216_v34, %v1196_v56  ;;  %v2570_v52 = vmul.f32 %v2035_v61, %v2371_v57  ;;  %v2573_v24 = vmul.f32 %v2035_v61, %v2373_v58  ;;  %v2576_v35 = vmul.f32 %v2034_v22, %v2366_v55 }
  0xc4   : > { %v2578_v48 = vadd.f32 %v1215_v25, %v1195_v29  ;;  %v2581_v30 = vmul.f32 %v2034_v22, %v2371_v57  ;;  %v2584_v38 = vmul.f32 %v2034_v22, %v2373_v58  ;;  %v747_v56 = vadd.f32 %v2503_v32, %v2403_v10 }
  0xc5   : > { %v782_v34 = vadd.f32 %v2397_v8, %v746_v60  ;;  %v463_v61 = vadd.f32 %v2507_v4, %v2406_v11  ;;  %v464_v26 = vadd.f32 %v2500_v12, %v2400_v9  ;;  %v784_v29 = vadd.f32 %v2472_v18, %v2453_v47  ;;  %v2039_v12 = vpop.permute.xlu0 %2038 }
  0xc6   : > { %v783_v25 = vadd.f32 %v2391_v6, %v747_v56  ;;  %v785_v22 = vadd.f32 %v2465_v16, %v2451_v44  ;;  %v565_v39 = vadd.f32 %v2469_v17, %v2447_v42  ;;  %v566_v8 = vadd.f32 %v2462_v15, %v2449_v43  ;;  %v1976_v47 = vpop.permute.xlu1 %1975 }
  0xc7   : > { %v818_v10 = vadd.f32 %v2456_v5, %v782_v34  ;;  %v563_v11 = vadd.f32 %v2394_v7, %v463_v61  ;;  %v564_v9 = vadd.f32 %v2388_v2, %v464_v26  ;;  %v820_v32 = vadd.f32 %v804_v23, %v784_v29 }
  0xc8   : > { %v819_v6 = vadd.f32 %v2459_v13, %v783_v25  ;;  %v821_v18 = vadd.f32 %v805_v33, %v785_v22  ;;  %v665_v4 = vadd.f32 %v649_v31, %v565_v39  ;;  %v666_v44 = vadd.f32 %v650_v37, %v566_v8 }
  0xc9   : > { %v663_v16 = vadd.f32 %v2494_v45, %v563_v11  ;;  %v664_v42 = vadd.f32 %v2497_v3, %v564_v9  ;;  %v1972_v17 = vunpack.i.h.bf16 %v1970_v36  ;;  %v1971_v43 = vunpack.i.l.bf16 %v1970_v36 }
  0xca   : > { %v834_v15 = vpack.c.bf16 %v819_v6, %v818_v10  ;;  %v835_v5 = vpack.c.bf16 %v821_v18, %v820_v32  ;;  %v680_v60 = vpack.c.bf16 %v666_v44, %v665_v4  ;;  %v2041_v7 = vunpack.i.h.bf16 %v2039_v12 }
  0xcb   : > { %v679_v56 = vpack.c.bf16 %v664_v42, %v663_v16  ;;  %v454_v2 = vmul.f32 %v1972_v17, %v2366_v55  ;;  %v737_v23 = vmul.f32 %v1972_v17, %v2371_v57  ;;  %v1182_v13 = vmul.f32 %v1972_v17, %v2373_v58  ;;  %v1994_v33 = vpop.permute.xlu1 %1993 }
  0xcc   : > { %1714 = vmatprep.subr.bf16.mxu1 %v834_v15  ;;  %v453_v31 = vmul.f32 %v1971_v43, %v2366_v55  ;;  %v736_v45 = vmul.f32 %v1971_v43, %v2371_v57  ;;  %v1181_v3 = vmul.f32 %v1971_v43, %v2373_v58  ;;  %v370_v37 = vmul.f32 %v2041_v7, %v2357_v51 }
  0xcd   : > { %1746 = vmatprep.subr.bf16.mxu0 %v679_v56  ;;  %1715 = vmatpush3.bf16.msra.mxu1 %v834_v15  ;;  %v717_v26 = vmul.f32 %v2041_v7, %v2362_v53  ;;  %v1162_v39 = vmul.f32 %v2041_v7, %v2364_v54  ;;  %v2040_v36 = vunpack.i.l.bf16 %v2039_v12  ;;  %v1978_v34 = vunpack.i.h.bf16 %v1976_v47 }
  0xce   : > { %1747 = vmatpush3.bf16.msra.mxu0 %v679_v56  ;;  %1716 = vmatprep.subr.bf16.mxu1 %v835_v5  ;;  %v2617_v61 = vadd.f32 %v454_v2, %v370_v37  ;;  %v1977_v29 = vunpack.i.l.bf16 %v1976_v47  ;;  %v1996_v25 = vunpack.i.h.bf16 %v1994_v33  ;;  %v1995_v22 = vunpack.i.l.bf16 %v1994_v33  ;;  %v3055_v33 = vld [vmem:[#allocation20_spill] sm:$0xff] }
  0xcf   : > { %1748 = vmatprep.subr.bf16.mxu0 %v680_v60  ;;  %v753_v8 = vadd.f32 %v737_v23, %v717_v26  ;;  %v1198_v10 = vadd.f32 %v1182_v13, %v1162_v39  ;;  %v369_v11 = vmul.f32 %v2040_v36, %v2357_v51  ;;  %v716_v9 = vmul.f32 %v2040_v36, %v2362_v53  ;;  %v3054_v23 = vld [vmem:[#allocation9_spill] sm:$0xff] }
  0xd0   : > { %v1161_v32 = vmul.f32 %v2040_v36, %v2364_v54  ;;  %v652_v6 = vmul.f32 %v1978_v34, %v2383_v0  ;;  %v807_v12 = vmul.f32 %v1978_v34, %v2385_v1  ;;  %v1252_v18 = vmul.f32 %v1978_v34, %v2375_v59  ;;  %v2000_v42 = vpop.permute.xlu1 %1999 }
  0xd1   : > { %v469_v4 = vadd.f32 %v453_v31, %v369_v11  ;;  %v752_v44 = vadd.f32 %v736_v45, %v716_v9  ;;  %v2626_v47 = vadd.f32 %v2424_v28, %v1198_v10  ;;  %1717 = vmatpush3.bf16.msra.mxu1 %v835_v5  ;;  %v651_v16 = vmul.f32 %v1977_v29, %v2383_v0 }
  0xd2   : > { %v1197_v17 = vadd.f32 %v1181_v3, %v1161_v32  ;;  %1749 = vmatpush3.bf16.msra.mxu0 %v680_v60  ;;  %v806_v43 = vmul.f32 %v1977_v29, %v2385_v1  ;;  %v1251_v15 = vmul.f32 %v1977_v29, %v2375_v59  ;;  %v2632_v7 = vadd.f32 %v1252_v18, %v2567_v19  ;;  %v3057_v29 = vld [vmem:[#allocation6_spill] sm:$0xff] }
  0xd3   : > { %v372_v56 = vmul.f32 %v1996_v25, %v2357_v51  ;;  %v719_v2 = vmul.f32 %v1996_v25, %v2362_v53  ;;  %v1164_v28 = vmul.f32 %v1996_v25, %v2364_v54  ;;  %v371_v5 = vmul.f32 %v1995_v22, %v2357_v51 }
  0xd4   : > { %v2639_v13 = vadd.f32 %v3054_v23, %v1197_v17  ;;  %v2642_v60 = vadd.f32 %v1251_v15, %v2578_v48  ;;  %v718_v31 = vmul.f32 %v1995_v22, %v2362_v53  ;;  %v1163_v45 = vmul.f32 %v1995_v22, %v2364_v54  ;;  %v3056_v48 = vld [vmem:[#allocation8_spill] sm:$0xff] }
  0xd5   : > { %v786_v19 = vadd.f32 %v2561_v21, %v2540_v46  ;;  %v787_v3 = vadd.f32 %v2554_v20, %v2535_v14  ;;  %v567_v37 = vadd.f32 %v2558_v63, %v2538_v27  ;;  %v568_v26 = vadd.f32 %v2551_v41, %v3055_v33  ;;  %v2022_v10 = vpop.permute.xlu1 %2021  ;;  %v3058_v17 = vld [vmem:[#allocation16_spill] sm:$0xff] }
  0xd6   : > { %v2002_v39 = vunpack.i.h.bf16 %v2000_v42  ;;  %v2001_v36 = vunpack.i.l.bf16 %v2000_v42  ;;  %v788_v34 = vadd.f32 %v3056_v48, %v752_v44  ;;  %v789_v25 = vadd.f32 %v3057_v29, %v753_v8 }
  0xd7   : > { %v822_v22 = vadd.f32 %v806_v43, %v786_v19  ;;  %v823_v11 = vadd.f32 %v807_v12, %v787_v3  ;;  %v667_v9 = vadd.f32 %v651_v16, %v567_v37  ;;  %v668_v46 = vadd.f32 %v652_v6, %v568_v26  ;;  %v3059_v19 = vld [vmem:[#allocation13_spill] sm:$0xff]  ;;  %v3060_v37 = vld [vmem:[#allocation7_spill] sm:$0xff] }
  0xd8   : > { %v456_v21 = vmul.f32 %v2002_v39, %v2366_v55  ;;  %v739_v14 = vmul.f32 %v2002_v39, %v2371_v57  ;;  %v1184_v27 = vmul.f32 %v2002_v39, %v2373_v58  ;;  %v455_v20 = vmul.f32 %v2001_v36, %v2366_v55 }
  0xd9   : > { %v836_v41 = vpack.c.bf16 %v823_v11, %v822_v22  ;;  %v681_v63 = vpack.c.bf16 %v668_v46, %v667_v9  ;;  %v738_v32 = vmul.f32 %v2001_v36, %v2371_v57  ;;  %v1183_v18 = vmul.f32 %v2001_v36, %v2373_v58  ;;  %v3062_v36 = vld [vmem:[#allocation15_spill] sm:$0xff] }
  0xda   : > { %v2662_v8 = vadd.f32 %v455_v20, %v371_v5  ;;  %v2664_v44 = vadd.f32 %v456_v21, %v372_v56  ;;  %v2666_v12 = vadd.f32 %v739_v14, %v719_v2  ;;  %v1200_v6 = vadd.f32 %v1184_v27, %v1164_v28  ;;  %v2028_v23 = vpop.permute.xlu1 %2027  ;;  %v3061_v56 = vld [vmem:[#allocation5_spill] sm:$0xff] }
  0xdb   : > { %1718 = vmatprep.subr.bf16.mxu1 %v836_v41  ;;  %1750 = vmatprep.subr.bf16.mxu0 %v681_v63  ;;  %v754_v16 = vadd.f32 %v738_v32, %v718_v31  ;;  %v1199_v42 = vadd.f32 %v1183_v18, %v1163_v45  ;;  %v824_v43 = vadd.f32 %v3058_v17, %v788_v34  ;;  %v2024_v15 = vunpack.i.h.bf16 %v2022_v10  ;;  %v3063_v34 = vld [vmem:[#allocation12_spill] sm:$0xff] }
  0xdc   : > { %1719 = vmatpush3.bf16.msra.mxu1 %v836_v41  ;;  %1751 = vmatpush3.bf16.msra.mxu0 %v681_v63  ;;  %v825_v3 = vadd.f32 %v3059_v19, %v789_v25  ;;  %v569_v5 = vadd.f32 %v3060_v37, %v469_v4  ;;  %v570_v33 = vadd.f32 %v3061_v56, %v2617_v61  ;;  %v2023_v2 = vunpack.i.l.bf16 %v2022_v10 }
  0xdd   : > { %v2674_v28 = vmul.f32 %v2024_v15, %v2353_v49  ;;  %v775_v31 = vmul.f32 %v2024_v15, %v2355_v50  ;;  %v1220_v45 = vmul.f32 %v2024_v15, %v2351_v40  ;;  %v2030_v26 = vunpack.i.h.bf16 %v2028_v23 }
  0xde   : > { %v837_v39 = vpack.c.bf16 %v825_v3, %v824_v43  ;;  %v669_v48 = vadd.f32 %v3062_v36, %v569_v5  ;;  %v670_v29 = vadd.f32 %v3063_v34, %v570_v33  ;;  %v555_v25 = vmul.f32 %v2023_v2, %v2353_v49 }
  0xdf   : > { %v774_v4 = vmul.f32 %v2023_v2, %v2355_v50  ;;  %v1219_v61 = vmul.f32 %v2023_v2, %v2351_v40  ;;  %v1236_v10 = vadd.f32 %v1220_v45, %v1200_v6  ;;  %v374_v22 = vmul.f32 %v2030_v26, %v2357_v51  ;;  %v2045_v14 = vpop.permute.xlu1 %2044 }
  0xe0   : > { %1720 = vmatprep.subr.bf16.mxu1 %v837_v39  ;;  %v682_v11 = vpack.c.bf16 %v670_v29, %v669_v48  ;;  %v721_v9 = vmul.f32 %v2030_v26, %v2362_v53  ;;  %v1166_v46 = vmul.f32 %v2030_v26, %v2364_v54  ;;  %v2029_v21 = vunpack.i.l.bf16 %v2028_v23  ;;  %v2056_v23 = vpop.permute.xlu0 %2055 }
  0xe1   : > { %1721 = vmatpush3.bf16.msra.mxu1 %v837_v39  ;;  %v1235_v27 = vadd.f32 %v1219_v61, %v1199_v42  ;;  %v2687_v20 = vadd.f32 %v2565_v62, %v374_v22  ;;  %v2047_v41 = vunpack.i.h.bf16 %v2045_v14  ;;  %v2046_v63 = vunpack.i.l.bf16 %v2045_v14 }
  0xe2   : > { %1752 = vmatprep.subr.bf16.mxu0 %v682_v11  ;;  %v373_v32 = vmul.f32 %v2029_v21, %v2357_v51  ;;  %v720_v18 = vmul.f32 %v2029_v21, %v2362_v53  ;;  %v2692_v6 = vadd.f32 %v2570_v52, %v721_v9  ;;  %v1165_v17 = vmul.f32 %v2029_v21, %v2364_v54 }
  0xe3   : > { %1753 = vmatpush3.bf16.msra.mxu0 %v682_v11  ;;  %v1202_v43 = vadd.f32 %v2573_v24, %v1166_v46  ;;  %v656_v42 = vmul.f32 %v2047_v41, %v2383_v0  ;;  %v811_v62 = vmul.f32 %v2047_v41, %v2385_v1  ;;  %v1256_v15 = vmul.f32 %v2047_v41, %v2375_v59 }
  0xe4   : > { %v2700_v19 = vadd.f32 %v2576_v35, %v373_v32  ;;  %v2703_v3 = vadd.f32 %v2581_v30, %v720_v18  ;;  %v1201_v52 = vadd.f32 %v2584_v38, %v1165_v17  ;;  %v655_v37 = vmul.f32 %v2046_v63, %v2383_v0  ;;  %v2051_v33 = vpop.permute.xlu1 %2050  ;;  %v2074_v9 = vpop.permute.xlu0 %2073 }
  0xe5   : > { %v810_v5 = vmul.f32 %v2046_v63, %v2385_v1  ;;  %v1255_v24 = vmul.f32 %v2046_v63, %v2375_v59  ;;  %v2709_v56 = vadd.f32 %v1256_v15, %v1236_v10  ;;  %v2058_v2 = vunpack.i.h.bf16 %v2056_v23 }
  0xe6   : > { %v2053_v45 = vunpack.i.h.bf16 %v2051_v33  ;;  %v2052_v26 = vunpack.i.l.bf16 %v2051_v33  ;;  %v2057_v39 = vunpack.i.l.bf16 %v2056_v23  ;;  %v790_v35 = vadd.f32 %v774_v4, %v754_v16 }
  0xe7   : > { %v2711_v36 = vadd.f32 %v1255_v24, %v1235_v27  ;;  %v376_v30 = vmul.f32 %v2058_v2, %v2357_v51  ;;  %v723_v38 = vmul.f32 %v2058_v2, %v2362_v53  ;;  %v1168_v48 = vmul.f32 %v2058_v2, %v2364_v54 }
  0xe8   : > { %v2717_v34 = vmul.f32 %v2053_v45, %v2353_v49  ;;  %v2720_v29 = vmul.f32 %v2053_v45, %v2355_v50  ;;  %v1222_v61 = vmul.f32 %v2053_v45, %v2351_v40  ;;  %v2724_v10 = vmul.f32 %v2052_v26, %v2353_v49 }
  0xe9   : > { %v776_v16 = vmul.f32 %v2052_v26, %v2355_v50  ;;  %v1221_v4 = vmul.f32 %v2052_v26, %v2351_v40  ;;  %v375_v22 = vmul.f32 %v2057_v39, %v2357_v51  ;;  %v722_v11 = vmul.f32 %v2057_v39, %v2362_v53  ;;  %v2062_v41 = vpop.permute.xlu1 %2061  ;;  %v2092_v26 = vpop.permute.xlu0 %2091 }
  0xea   : > { %v2730_v46 = vadd.f32 %v1222_v61, %v1202_v43  ;;  %v1167_v21 = vmul.f32 %v2057_v39, %v2364_v54  ;;  %v791_v14 = vadd.f32 %v775_v31, %v2666_v12  ;;  %v826_v27 = vadd.f32 %v810_v5, %v790_v35 }
  0xeb   : > { %v2734_v63 = vadd.f32 %v1221_v4, %v1201_v52  ;;  %v571_v32 = vadd.f32 %v555_v25, %v2662_v8  ;;  %v572_v18 = vadd.f32 %v2674_v28, %v2664_v44  ;;  %v2064_v17 = vunpack.i.h.bf16 %v2062_v41 }
  0xec   : > { %v827_v15 = vadd.f32 %v811_v62, %v791_v14  ;;  %v2063_v23 = vunpack.i.l.bf16 %v2062_v41  ;;  %v2076_v24 = vunpack.i.h.bf16 %v2074_v9  ;;  %v2075_v33 = vunpack.i.l.bf16 %v2074_v9 }
  0xed   : > { %v671_v43 = vadd.f32 %v655_v37, %v571_v32  ;;  %v672_v2 = vadd.f32 %v656_v42, %v572_v18  ;;  %v460_v45 = vmul.f32 %v2064_v17, %v2366_v55  ;;  %v743_v12 = vmul.f32 %v2064_v17, %v2371_v57 }
  0xee   : > { %v838_v31 = vpack.c.bf16 %v827_v15, %v826_v27  ;;  %v1188_v52 = vmul.f32 %v2064_v17, %v2373_v58  ;;  %v459_v5 = vmul.f32 %v2063_v23, %v2366_v55  ;;  %v742_v8 = vmul.f32 %v2063_v23, %v2371_v57  ;;  %v2068_v37 = vpop.permute.xlu1 %2067 }
  0xef   : > { %v683_v25 = vpack.c.bf16 %v672_v2, %v671_v43  ;;  %v2744_v44 = vadd.f32 %v460_v45, %v376_v30  ;;  %v759_v28 = vadd.f32 %v743_v12, %v723_v38  ;;  %v1187_v62 = vmul.f32 %v2063_v23, %v2373_v58 }
  0xf0   : > { %1722 = vmatprep.subr.bf16.mxu1 %v838_v31  ;;  %v475_v42 = vadd.f32 %v459_v5, %v375_v22  ;;  %v758_v39 = vadd.f32 %v742_v8, %v722_v11  ;;  %v1204_v35 = vadd.f32 %v1188_v52, %v1168_v48  ;;  %v2748_v61 = vmul.f32 %v2076_v24, %v2353_v49 }
  0xf1   : > { %1754 = vmatprep.subr.bf16.mxu0 %v683_v25  ;;  %v1203_v4 = vadd.f32 %v1187_v62, %v1167_v21  ;;  %v779_v9 = vmul.f32 %v2076_v24, %v2355_v50  ;;  %v1224_v14 = vmul.f32 %v2076_v24, %v2351_v40  ;;  %v559_v30 = vmul.f32 %v2075_v33, %v2353_v49 }
  0xf2   : > { %v778_v38 = vmul.f32 %v2075_v33, %v2355_v50  ;;  %v1223_v27 = vmul.f32 %v2075_v33, %v2351_v40  ;;  %1723 = vmatpush3.bf16.msra.mxu1 %v838_v31  ;;  %1755 = vmatpush3.bf16.msra.mxu0 %v683_v25  ;;  %v2094_v22 = vunpack.i.h.bf16 %v2092_v26  ;;  %v2093_v11 = vunpack.i.l.bf16 %v2092_v26 }
  0xf3   : > { %v1240_v48 = vadd.f32 %v1224_v14, %v1204_v35  ;;  %v2070_v41 = vunpack.i.h.bf16 %v2068_v37  ;;  %v2069_v32 = vunpack.i.l.bf16 %v2068_v37  ;;  %v792_v18 = vadd.f32 %v776_v16, %v2703_v3  ;;  %v2080_v24 = vpop.permute.xlu1 %2079 }
  0xf4   : > { %v1239_v21 = vadd.f32 %v1223_v27, %v1203_v4  ;;  %v2757_v17 = vmul.f32 %v2094_v22, %v2383_v0  ;;  %v815_v15 = vmul.f32 %v2094_v22, %v2385_v1  ;;  %v1260_v23 = vmul.f32 %v2094_v22, %v2375_v59 }
  0xf5   : > { %v659_v33 = vmul.f32 %v2093_v11, %v2383_v0  ;;  %v814_v43 = vmul.f32 %v2093_v11, %v2385_v1  ;;  %v1259_v2 = vmul.f32 %v2093_v11, %v2375_v59  ;;  %v658_v45 = vmul.f32 %v2070_v41, %v2383_v0 }
  0xf6   : > { %v2765_v12 = vadd.f32 %v1260_v23, %v1240_v48  ;;  %v813_v3 = vmul.f32 %v2070_v41, %v2385_v1  ;;  %v1258_v16 = vmul.f32 %v2070_v41, %v2375_v59  ;;  %v657_v31 = vmul.f32 %v2069_v32, %v2383_v0 }
  0xf7   : > { %v2770_v52 = vadd.f32 %v1259_v2, %v1239_v21  ;;  %v812_v5 = vmul.f32 %v2069_v32, %v2385_v1  ;;  %v1257_v8 = vmul.f32 %v2069_v32, %v2375_v59  ;;  %v2082_v25 = vunpack.i.h.bf16 %v2080_v24 }
  0xf8   : > { %v2775_v62 = vadd.f32 %v1258_v16, %v2730_v46  ;;  %v2081_v26 = vunpack.i.l.bf16 %v2080_v24  ;;  %v793_v37 = vadd.f32 %v2720_v29, %v2692_v6  ;;  %v573_v35 = vadd.f32 %v2724_v10, %v2700_v19  ;;  %v2086_v11 = vpop.permute.xlu1 %2085 }
  0xf9   : > { %v2782_v4 = vadd.f32 %v1257_v8, %v2734_v63  ;;  %v378_v14 = vmul.f32 %v2082_v25, %v2357_v51  ;;  %v725_v27 = vmul.f32 %v2082_v25, %v2362_v53  ;;  %v1170_v22 = vmul.f32 %v2082_v25, %v2364_v54  ;;  %v3064_v25 = vld [vmem:[#allocation19_spill] sm:$0xff] }
  0xfa   : > { %v377_v46 = vmul.f32 %v2081_v26, %v2357_v51  ;;  %v724_v48 = vmul.f32 %v2081_v26, %v2362_v53  ;;  %v1169_v41 = vmul.f32 %v2081_v26, %v2364_v54  ;;  %v828_v6 = vadd.f32 %v812_v5, %v792_v18  ;;  %v3065_v26 = vld [vmem:[#allocation11_spill] sm:$0xff] }
  0xfb   : > { %v829_v29 = vadd.f32 %v813_v3, %v793_v37  ;;  %v574_v19 = vadd.f32 %v2717_v34, %v2687_v20  ;;  %v673_v10 = vadd.f32 %v657_v31, %v573_v35  ;;  %v2088_v63 = vunpack.i.h.bf16 %v2086_v11  ;;  %v3066_v35 = vld [vmem:[#allocation18_spill] sm:$0xff] }
  0xfc   : > { %v2087_v32 = vunpack.i.l.bf16 %v2086_v11  ;;  %v794_v21 = vadd.f32 %v778_v38, %v758_v39  ;;  %v795_v23 = vadd.f32 %v779_v9, %v759_v28  ;;  %v575_v24 = vadd.f32 %v559_v30, %v475_v42  ;;  %v3069_v11 = vld [vmem:[#allocation21_spill] sm:$0xff] }
  0xfd   : > { %v839_v2 = vpack.c.bf16 %v829_v29, %v828_v6  ;;  %v674_v16 = vadd.f32 %v658_v45, %v574_v19  ;;  %v462_v8 = vmul.f32 %v2088_v63, %v2366_v55  ;;  %v745_v51 = vmul.f32 %v2088_v63, %v2371_v57  ;;  %v2098_v34 = vpop.permute.xlu1 %2097 }
  0xfe   : > { %v1190_v53 = vmul.f32 %v2088_v63, %v2373_v58  ;;  %v461_v54 = vmul.f32 %v2087_v32, %v2366_v55  ;;  %v744_v18 = vmul.f32 %v2087_v32, %v2371_v57  ;;  %v1189_v20 = vmul.f32 %v2087_v32, %v2373_v58 }
  0xff   : > { %1724 = vmatprep.subr.bf16.mxu1 %v839_v2  ;;  %v684_v3 = vpack.c.bf16 %v674_v16, %v673_v10  ;;  %v478_v39 = vadd.f32 %v462_v8, %v378_v14  ;;  %v761_v28 = vadd.f32 %v745_v51, %v725_v27  ;;  %v830_v42 = vadd.f32 %v814_v43, %v794_v21  ;;  %v3067_v14 = vld [vmem:[#allocation10_spill] sm:$0xff] }
 0x100   : > { %v477_v9 = vadd.f32 %v461_v54, %v377_v46  ;;  %v760_v30 = vadd.f32 %v744_v18, %v724_v48  ;;  %v1205_v38 = vadd.f32 %v1189_v20, %v1169_v41  ;;  %v1206_v45 = vadd.f32 %v1190_v53, %v1170_v22  ;;  %1725 = vmatpush3.bf16.msra.mxu1 %v839_v2  ;;  %v3068_v27 = vld [vmem:[#allocation22_spill] sm:$0xff] }
 0x101   : > { %1756 = vmatprep.subr.bf16.mxu0 %v684_v3  ;;  %v831_v31 = vadd.f32 %v815_v15, %v795_v23  ;;  %v576_v55 = vadd.f32 %v2748_v61, %v2744_v44  ;;  %v675_v5 = vadd.f32 %v659_v33, %v575_v24  ;;  %v2100_v57 = vunpack.i.h.bf16 %v2098_v34 }
 0x102   : > { %1757 = vmatpush3.bf16.msra.mxu0 %v684_v3  ;;  %v2099_v58 = vunpack.i.l.bf16 %v2098_v34  ;;  %v1263_v37 = vadd.f32 %v3065_v26, %v3064_v25  ;;  %v1264_v43 = vadd.f32 %v3067_v14, %v3066_v35  ;;  %v2806_v46 = vpack.c.bf16 %v3069_v11, %v3068_v27  ;;  %v2104_v61 = vpop.permute.xlu1 %2103  ;;  %v2121_v25 = vld [vmem:[%s3030_s1 + $0xac] ss:$12 sps:$4 sm:$0xff]   ;;  %v2122_v26 = vld [vmem:[%s3030_s1 + $0xa8] ss:$12 sps:$4 sm:$0xff]  }
 0x103   : > { %v840_v22 = vpack.c.bf16 %v831_v31, %v830_v42  ;;  %v676_v15 = vadd.f32 %v2757_v17, %v576_v55  ;;  %v562_v48 = vmul.f32 %v2100_v57, %v2353_v49  ;;  %v781_v44 = vmul.f32 %v2100_v57, %v2355_v50  ;;  %v2117_v55 = vld [vmem:[%s3030_s1 + $0x7c] ss:$12 sps:$4 sm:$0xff]   ;;  %v2125_v14 = vld [vmem:[%s3030_s1 + $0x20] ss:$12 sps:$4 sm:$0xff]   ;;  %v2127_v27 = vld [vmem:[%s3030_s1 + $0x38] ss:$12 sps:$4 sm:$0xff]  }
 0x104   : > { %v1226_v33 = vmul.f32 %v2100_v57, %v2351_v40  ;;  %v561_v41 = vmul.f32 %v2099_v58, %v2353_v49  ;;  %v780_v6 = vmul.f32 %v2099_v58, %v2355_v50  ;;  %v1225_v29 = vmul.f32 %v2099_v58, %v2351_v40  ;;  %v2119_v57 = vld [vmem:[%s3030_s1 + $0x94] ss:$12 sps:$4 sm:$0xff]   ;;  %v2120_v58 = vld [vmem:[%s3030_s1 + $0x90] ss:$12 sps:$4 sm:$0xff]   ;;  %v2128_v11 = vld [vmem:[%s3030_s1 + $0x98] ss:$12 sps:$4 sm:$0xff]  }
 0x105   : > { %1726 = vmatprep.subr.bf16.mxu1 %v840_v22  ;;  %v685_v19 = vpack.c.bf16 %v676_v15, %v675_v5  ;;  %v2106_v10 = vunpack.i.h.bf16 %v2104_v61  ;;  %v2105_v63 = vunpack.i.l.bf16 %v2104_v61  ;;  %v797_v32 = vadd.f32 %v781_v44, %v761_v28  ;;  %v2118_v5 = vld [vmem:[%s3030_s1 + $0x78] ss:$12 sps:$4 sm:$0xff]   ;;  %v2124_v35 = vld [vmem:[%s3030_s1 + $0x68] ss:$12 sps:$4 sm:$0xff]  }
 0x106   : > { %1727 = vmatpush3.bf16.msra.mxu1 %v840_v22  ;;  %v1241_v17 = vadd.f32 %v1225_v29, %v1205_v38  ;;  %v1242_v21 = vadd.f32 %v1226_v33, %v1206_v45  ;;  %v796_v23 = vadd.f32 %v780_v6, %v760_v30  ;;  %v577_v24 = vadd.f32 %v561_v41, %v477_v9  ;;  %v3070_v9 = vld [vmem:[#allocation17_spill] sm:$0xff]  ;;  %v2130_v22 = vld [vmem:[%s3030_s1 + $0xb0] ss:$12 sps:$4 sm:$0xff]  }
 0x107   : > { %1758 = vmatprep.subr.bf16.mxu0 %v685_v19  ;;  %v662_v2 = vmul.f32 %v2106_v10, %v2383_v0  ;;  %v817_v16 = vmul.f32 %v2106_v10, %v2385_v1  ;;  %v1262_v49 = vmul.f32 %v2106_v10, %v2375_v59  ;;  %v661_v50 = vmul.f32 %v2105_v63, %v2383_v0  ;;  %v3071_v0 = vld [vmem:[#allocation14_spill] sm:$0xff] }
 0x108   : > { %1759 = vmatpush3.bf16.msra.mxu0 %v685_v19  ;;  %v816_v40 = vmul.f32 %v2105_v63, %v2385_v1  ;;  %v1261_v8 = vmul.f32 %v2105_v63, %v2375_v59  ;;  %v578_v51 = vadd.f32 %v562_v48, %v478_v39  ;;  %v1279_v53 = vpack.c.bf16 %v1264_v43, %v1263_v37  ;;  %v2123_v37 = vld [vmem:[%s3030_s1 + $0x8] ss:$12 sps:$4 sm:$0xff]   ;;  %v2126_v43 = vld [vmem:[%s3030_s1 + $0x80] ss:$12 sps:$4 sm:$0xff]  }
 0x109   : > { %v1278_v54 = vadd.f32 %v1262_v49, %v1242_v21  ;;  %v833_v18 = vadd.f32 %v817_v16, %v797_v32  ;;  %v677_v20 = vadd.f32 %v661_v50, %v577_v24  ;;  %v1281_v34 = vpack.c.bf16 %v2632_v7, %v2642_v60 }
 0x10a   : > { %v1277_v3 = vadd.f32 %v1261_v8, %v1241_v17  ;;  %v832_v28 = vadd.f32 %v816_v40, %v796_v23  ;;  %v678_v42 = vadd.f32 %v662_v2, %v578_v51  ;;  %v1269_v30 = vadd.f32 %v3070_v9, %v2639_v13  ;;  %v2110_v13 = vld [vmem:[%s3030_s1 + $0x18] ss:$12 sps:$4 sm:$0xff]  }
 0x10b   : > { %v1270_v38 = vadd.f32 %v3071_v0, %v2626_v47  ;;  %v1283_v59 = vpack.c.bf16 %v2709_v56, %v2711_v36  ;;  %v1284_v1 = vpack.c.bf16 %v2775_v62, %v2782_v4  ;;  %v2833_v39 = vpack.c.bf16 %v2765_v12, %v2770_v52  ;;  %v2109_v47 = vld [vmem:[%s3030_s1 + $0x1c] ss:$12 sps:$4 sm:$0xff]   ;;  %v2111_v56 = vld [vmem:[%s3030_s1 + $0x34] ss:$12 sps:$4 sm:$0xff]   ;;  %v2113_v12 = vld [vmem:[%s3030_s1 + $0x4c] ss:$12 sps:$4 sm:$0xff]  }
 0x10c   : > { %v841_v7 = vpack.c.bf16 %v833_v18, %v832_v28  ;;  %v686_v60 = vpack.c.bf16 %v678_v42, %v677_v20  ;;  %v2835_v45 = vpack.c.bf16 %v1278_v54, %v1277_v3  ;;  %v2112_v36 = vld [vmem:[%s3030_s1 + $0x30] ss:$12 sps:$4 sm:$0xff]   ;;  %v2114_v52 = vld [vmem:[%s3030_s1 + $0x48] ss:$12 sps:$4 sm:$0xff]   ;;  %v2116_v4 = vld [vmem:[%s3030_s1 + $0x60] ss:$12 sps:$4 sm:$0xff]  }
 0x10d   : > { %v1282_v31 = vpack.c.bf16 %v1270_v38, %v1269_v30  ;;  %v2115_v62 = vld [vmem:[%s3030_s1 + $0x64] ss:$12 sps:$4 sm:$0xff]   ;;  %v2929_v0 = vld [vmem:[%s3032_s3] ss:$0 sm:$0xff] }
 0x10e   : > { %1728 = vmatprep.subr.bf16.mxu1 %v841_v7  ;;  %1760 = vmatprep.subr.bf16.mxu0 %v686_v60 }
 0x10f   : > { %1729 = vmatpush3.bf16.msra.mxu1 %v841_v7  ;;  %1761 = vmatpush3.bf16.msra.mxu0 %v686_v60 }
 0x110   : > { %1778 = vmatprep.subr.bf16.mxu0 %v1279_v53  ;;  %1810 = vmatprep.subr.bf16.mxu1 %v1279_v53 }
 0x112   : > { %1731 = vmatmul.mubr.bf16.vlgmr.msra.gmra.mrb[0].mxu1 %v2109_v47  ;;  %1763 = vmatmul.mubr.bf16.vlgmr.msra.gmra.mrb[0].mxu0 %v2110_v13 }
 0x113   : > { %1779 = vmatpush3.bf16.msra.mxu0 %v1279_v53  ;;  %1818 = vmatpush3.bf16.msra.mxu1 %v1279_v53 }
 0x114   : > { %1780 = vmatprep.subr.bf16.mxu0 %v2806_v46  ;;  %1811 = vmatprep.subr.bf16.mxu1 %v2806_v46 }
 0x115   : > { %1734 = vmatprep.mubr.bf16.mxu1 %v2111_v56  ;;  %1766 = vmatprep.mubr.bf16.mxu0 %v2112_v36 }
 0x117   : > { %1781 = vmatpush3.bf16.msra.mxu0 %v2806_v46  ;;  %1819 = vmatpush3.bf16.msra.mxu1 %v2806_v46  ;;  %v2129_v46 = vld [vmem:[%s3030_s1 + $0x50] ss:$12 sps:$4 sm:$0xff]  }
 0x118   : > { %1782 = vmatprep.subr.bf16.mxu0 %v1281_v34  ;;  %1812 = vmatprep.subr.bf16.mxu1 %v1281_v34 }
 0x11a   : > { %1735 = vmatmul.mubr.bf16.gmra.mrb[4].mxu1 %v2113_v12  ;;  %1767 = vmatmul.mubr.bf16.gmra.mrb[4].mxu0 %v2114_v52 }
 0x11b   : > { %1783 = vmatpush3.bf16.msra.mxu0 %v1281_v34  ;;  %1820 = vmatpush3.bf16.msra.mxu1 %v1281_v34 }
 0x11c   : > { %1784 = vmatprep.subr.bf16.mxu0 %v1282_v31  ;;  %1813 = vmatprep.subr.bf16.mxu1 %v1282_v31 }
 0x11d   : > { %1738 = vmatprep.mubr.bf16.mxu1 %v2115_v62  ;;  %1770 = vmatprep.mubr.bf16.mxu0 %v2116_v4 }
 0x11f   : > { %1785 = vmatpush3.bf16.msra.mxu0 %v1282_v31  ;;  %1821 = vmatpush3.bf16.msra.mxu1 %v1282_v31 }
 0x120   : > { %1786 = vmatprep.subr.bf16.mxu0 %v1283_v59  ;;  %1814 = vmatprep.subr.bf16.mxu1 %v1283_v59 }
 0x122   : > { %1739 = vmatmul.mubr.bf16.gmra.mrb[8].mxu1 %v2117_v55  ;;  %1771 = vmatmul.mubr.bf16.gmra.mrb[8].mxu0 %v2118_v5 }
 0x123   : > { %1787 = vmatpush3.bf16.msra.mxu0 %v1283_v59  ;;  %1822 = vmatpush3.bf16.msra.mxu1 %v1283_v59 }
 0x124   : > { %1788 = vmatprep.subr.bf16.mxu0 %v1284_v1  ;;  %1815 = vmatprep.subr.bf16.mxu1 %v1284_v1 }
 0x125   : > { %1742 = vmatprep.mubr.bf16.mxu1 %v2119_v57  ;;  %1774 = vmatprep.mubr.bf16.mxu0 %v2120_v58 }
 0x127   : > { %1789 = vmatpush3.bf16.msra.mxu0 %v1284_v1  ;;  %1823 = vmatpush3.bf16.msra.mxu1 %v1284_v1 }
 0x128   : > { %1790 = vmatprep.subr.bf16.mxu0 %v2833_v39  ;;  %1816 = vmatprep.subr.bf16.mxu1 %v2833_v39 }
 0x12a   : > { %1743 = vmatmul.mubr.bf16.gmra.mrb[12].mxu1 %v2121_v25  ;;  %1775 = vmatmul.mubr.bf16.gmra.mrb[12].mxu0 %v2122_v26 }
 0x12b   : > { %1791 = vmatpush3.bf16.msra.mxu0 %v2833_v39  ;;  %1824 = vmatpush3.bf16.msra.mxu1 %v2833_v39 }
 0x12c   : > { %1792 = vmatprep.subr.bf16.mxu0 %v2835_v45  ;;  %1817 = vmatprep.subr.bf16.mxu1 %v2835_v45 }
 0x12d   : > { %1794 = vmatprep.mubr.bf16.mxu0 %v2123_v37  ;;  %1802 = vmatprep.mubr.bf16.mxu1 %v2124_v35 }
 0x12f   : > { %1793 = vmatpush3.bf16.msra.mxu0 %v2835_v45  ;;  %1825 = vmatpush3.bf16.msra.mxu1 %v2835_v45 }
 0x132   : > { %1795 = vmatmul.mubr.bf16.vlgmr.msra.gmra.mrb[0].mxu0 %v2125_v14  ;;  %1803 = vmatmul.mubr.bf16.vlgmr.msra.gmra.mrb[16].mxu1 %v2126_v43 }
 0x133   : > { %1798 = vmatprep.mubr.bf16.mxu0 %v2127_v27  ;;  %1806 = vmatprep.mubr.bf16.mxu1 %v2128_v11 }
 0x13a   : > { %1799 = vmatmul.mubr.bf16.gmra.mrb[4].mxu0 %v2129_v46  ;;  %1807 = vmatmul.mubr.bf16.gmra.mrb[20].mxu1 %v2130_v22 }
 0x1e5   : > { %v1732_v15 = vpop.f32.mrb[0].mxu1 }
 0x1e6   : > { %v940_v48 = vpop.f32.mrb[1].mxu1 }
 0x1e7   : > { %v1733_v44 = vpop.f32.mrb[2].mxu1 }
 0x1e8   : > { %v943_v61 = vpop.f32.mrb[3].mxu1 }
 0x1ed   : > { %v2915_v33 = vpop.f32.mrb[4].mxu1 }
 0x1ee   : > { %v2917_v41 = vpop.f32.mrb[5].mxu1 }
 0x1ef   : > { %v2919_v6 = vpop.f32.mrb[6].mxu1 }
 0x1f0   : > { %v2921_v29 = vpop.f32.mrb[7].mxu1 }
 0x1f5   : > { %v1740_v19 = vpop.f32.mrb[8].mxu1  ;;  %v1772_v10 = vpop.f32.mrb[8].mxu0 }
 0x1f6   : > { %v1126_v63 = vadd.f32 %v1772_v10, %v1740_v19  ;;  %v972_v32 = vpop.f32.mrb[9].mxu1  ;;  %v1117_v17 = vpop.f32.mrb[9].mxu0 }
 0x1f7   : > { %v1118_v21 = vadd.f32 %v1117_v17, %v972_v32  ;;  %v1741_v23 = vpop.f32.mrb[10].mxu1  ;;  %v1773_v24 = vpop.f32.mrb[10].mxu0 }
 0x1f8   : > { %v1129_v2 = vadd.f32 %v1773_v24, %v1741_v23  ;;  %v975_v16 = vpop.f32.mrb[11].mxu1  ;;  %v1120_v49 = vpop.f32.mrb[11].mxu0 }
 0x1f9   : > { %v1121_v50 = vadd.f32 %v1120_v49, %v975_v16 }
 0x1fd   : > { %v1744_v40 = vpop.f32.mrb[12].mxu1  ;;  %v1776_v8 = vpop.f32.mrb[12].mxu0 }
 0x1fe   : > { %v1142_v51 = vadd.f32 %v1776_v8, %v1744_v40  ;;  %v988_v53 = vpop.f32.mrb[13].mxu1  ;;  %v1133_v54 = vpop.f32.mrb[13].mxu0 }
 0x1ff   : > { %v1134_v18 = vadd.f32 %v1133_v54, %v988_v53  ;;  %v1745_v20 = vpop.f32.mrb[14].mxu1  ;;  %v1777_v34 = vpop.f32.mrb[14].mxu0 }
 0x200   : > { %v1145_v3 = vadd.f32 %v1777_v34, %v1745_v20  ;;  %v991_v28 = vpop.f32.mrb[15].mxu1  ;;  %v1136_v42 = vpop.f32.mrb[15].mxu0 }
 0x201   : > { %v2923_v9 = vadd.f32 %v1136_v42, %v991_v28 }
 0x205   : > { %v1796_v30 = vpop.f32.mrb[0].mxu0  ;;  %v1804_v38 = vpop.f32.mrb[16].mxu1 }
 0x206   : > { %v1826_v59 = vadd.f32 %v1796_v30, %v1732_v15  ;;  %v1458_v1 = vadd.f32 %v1804_v38, %v1126_v63  ;;  %v1385_v39 = vpop.f32.mrb[1].mxu0  ;;  %v1417_v7 = vpop.f32.mrb[17].mxu1 }
 0x207   : > { %v1827_v60 = vadd.f32 %v1385_v39, %v940_v48  ;;  %v1456_v45 = vadd.f32 %v1417_v7, %v1118_v21  ;;  %v1797_v31 = vpop.f32.mrb[2].mxu0  ;;  %v1805_v47 = vpop.f32.mrb[18].mxu1 }
 0x208   : > { %v1473_v13 = vadd.f32 %v1826_v59, %v2929_v0  ;;  %v1481_v56 = vadd.f32 %v2929_v0, %v1458_v1  ;;  %v1828_v36 = vadd.f32 %v1797_v31, %v1733_v44  ;;  %v1459_v12 = vadd.f32 %v1805_v47, %v1129_v2  ;;  %v1388_v52 = vpop.f32.mrb[3].mxu0  ;;  %v1420_v62 = vpop.f32.mrb[19].mxu1 }
 0x209   : > { %v1471_v4 = vadd.f32 %v1827_v60, %v2929_v0  ;;  %v1479_v55 = vadd.f32 %v2929_v0, %v1456_v45  ;;  %v1829_v5 = vadd.f32 %v1388_v52, %v943_v61  ;;  %v1457_v57 = vadd.f32 %v1420_v62, %v1121_v50 }
 0x20a   : > { %v1489_v58 = vmax.f32 %v1473_v13, 0.0  ;;  %v1497_v25 = vmax.f32 %v1481_v56, 0.0  ;;  %v1474_v26 = vadd.f32 %v1828_v36, %v2929_v0  ;;  %v1482_v37 = vadd.f32 %v2929_v0, %v1459_v12 }
 0x20b   : > { %v1487_v35 = vmax.f32 %v1471_v4, 0.0  ;;  %v1495_v14 = vmax.f32 %v1479_v55, 0.0  ;;  %v1472_v43 = vadd.f32 %v1829_v5, %v2929_v0  ;;  %v1480_v27 = vadd.f32 %v2929_v0, %v1457_v57 }
 0x20c   : > { %1505 = vst [vmem:[%s2941_s26 + $0x10] sm:$0xff] %v1489_v58  ;;  %1513 = vst [vmem:[%s2941_s26 + $0x50] sm:$0xff] %v1497_v25  ;;  %v1490_v11 = vmax.f32 %v1474_v26, 0.0  ;;  %v1498_v46 = vmax.f32 %v1482_v37, 0.0 }
 0x20d   : > { %1503 = vst [vmem:[%s2941_s26] sm:$0xff] %v1487_v35  ;;  %1511 = vst [vmem:[%s2941_s26 + $0x40] sm:$0xff] %v1495_v14  ;;  %v1488_v22 = vmax.f32 %v1472_v43, 0.0  ;;  %v1496_v15 = vmax.f32 %v1480_v27, 0.0  ;;  %v1800_v48 = vpop.f32.mrb[4].mxu0  ;;  %v1808_v44 = vpop.f32.mrb[20].mxu1 }
 0x20e   : > { %1506 = vst [vmem:[%s2941_s26 + $0x18] sm:$0xff] %v1490_v11  ;;  %1514 = vst [vmem:[%s2941_s26 + $0x58] sm:$0xff] %v1498_v46  ;;  %v1830_v61 = vadd.f32 %v1800_v48, %v2915_v33  ;;  %v1462_v19 = vadd.f32 %v1808_v44, %v1142_v51  ;;  %v1401_v10 = vpop.f32.mrb[5].mxu0  ;;  %v1433_v63 = vpop.f32.mrb[21].mxu1 }
 0x20f   : > { %1504 = vst [vmem:[%s2941_s26 + $0x8] sm:$0xff] %v1488_v22  ;;  %1512 = vst [vmem:[%s2941_s26 + $0x48] sm:$0xff] %v1496_v15  ;;  %v1831_v32 = vadd.f32 %v1401_v10, %v2917_v41  ;;  %v1460_v17 = vadd.f32 %v1433_v63, %v1134_v18  ;;  %v1801_v21 = vpop.f32.mrb[6].mxu0  ;;  %v1809_v23 = vpop.f32.mrb[22].mxu1 }
 0x210   : > { %v1477_v24 = vadd.f32 %v1830_v61, %v2929_v0  ;;  %v1485_v2 = vadd.f32 %v2929_v0, %v1462_v19  ;;  %v1832_v16 = vadd.f32 %v1801_v21, %v2919_v6  ;;  %v1463_v49 = vadd.f32 %v1809_v23, %v1145_v3  ;;  %v1404_v33 = vpop.f32.mrb[7].mxu0  ;;  %v1436_v50 = vpop.f32.mrb[23].mxu1 }
 0x211   : > { %v1475_v40 = vadd.f32 %v1831_v32, %v2929_v0  ;;  %v1483_v8 = vadd.f32 %v2929_v0, %v1460_v17  ;;  %v1833_v41 = vadd.f32 %v1404_v33, %v2921_v29  ;;  %v1461_v51 = vadd.f32 %v1436_v50, %v2923_v9 }
 0x212   : > { %v1493_v53 = vmax.f32 %v1477_v24, 0.0  ;;  %v1501_v54 = vmax.f32 %v1485_v2, 0.0  ;;  %v1478_v6 = vadd.f32 %v1832_v16, %v2929_v0  ;;  %v1486_v18 = vadd.f32 %v2929_v0, %v1463_v49 }
 0x213   : > { %v1491_v20 = vmax.f32 %v1475_v40, 0.0  ;;  %v1499_v34 = vmax.f32 %v1483_v8, 0.0  ;;  %v1476_v29 = vadd.f32 %v1833_v41, %v2929_v0  ;;  %v1484_v3 = vadd.f32 %v2929_v0, %v1461_v51 }
 0x214   : > { %1509 = vst [vmem:[%s2941_s26 + $0x30] sm:$0xff] %v1493_v53  ;;  %1517 = vst [vmem:[%s2941_s26 + $0x70] sm:$0xff] %v1501_v54  ;;  %v1494_v28 = vmax.f32 %v1478_v6, 0.0  ;;  %v1502_v42 = vmax.f32 %v1486_v18, 0.0 }
 0x215   : > { %1507 = vst [vmem:[%s2941_s26 + $0x20] sm:$0xff] %v1491_v20  ;;  %1515 = vst [vmem:[%s2941_s26 + $0x60] sm:$0xff] %v1499_v34  ;;  %v1492_v9 = vmax.f32 %v1476_v29, 0.0  ;;  %v1500_v30 = vmax.f32 %v1484_v3, 0.0 }
 0x216   : > { %1510 = vst [vmem:[%s2941_s26 + $0x38] sm:$0xff] %v1494_v28  ;;  %1518 = vst [vmem:[%s2941_s26 + $0x78] sm:$0xff] %v1502_v42 }
 0x217   : > { %1508 = vst [vmem:[%s2941_s26 + $0x28] sm:$0xff] %v1492_v9  ;;  %1516 = vst [vmem:[%s2941_s26 + $0x68] sm:$0xff] %v1500_v30 }
 0x218   : > { %2144 = shalt.err (!%p2141_p5)
}
 0x219   : > { %s2145_s12 = scalar_lea.hbm %s2971_s6, 2048  ;;  %s2149_s21 = scalar_lea.hbm %s3033_s4, 4096 }
 0x21a   : > { %p2146_p6 = scmp.ne.s32.totalorder %s2971_s6, %s2145_s12  ;;  %p2150_p10 = scmp.lt.u32.totalorder %s2971_s6, %s3033_s4 }
 0x21b   : > { %p2151_p11 = scmp.lt.u32.totalorder %s2149_s21, %s2145_s12  ;;  %p2153_p13 = scmp.lt.u32.totalorder %s2145_s12, %s2971_s6 }
 0x21c   : > { %p2147_p7 = pnand %p2146_p6, %p2283_p4 }
 0x21d   : > { %p2152_p12 = por %p2151_p11, %p2150_p10 }
 0x21e   : > { %p2148_p9 = pneg %p2147_p7 }
 0x21f   : > { %p2154_p0 = por %p2153_p13, %p2152_p12 }
 0x221   : > { %p2155_p1 = pnand %p2154_p0, %p2148_p9 }
 0x223   : > { %2158 = shalt.err (!%p2155_p1)
}
 0x224   : > { %s2216_s26 = smov 128   ;;  %s2217_s29 = smov 8  }
 0x225   : > { %1858 = dma.vmem_to_hbm [thread:$0]  (%p2283_p4), %s2973_s30, 2048, %s2971_s6, %s2983_s7, %s2216_s26, %s2216_s26, %s2217_s29  }
 0x226 PF: > { %p1864_p2 = scmp.ge.s32.totalorder %s2209_s20, 2  ;;  %s1550_s18 = sand.u32 1, %s2189_s15  }
 0x227   : > { %s1551_s5 = scalar_lea.sflag [#allocation3], %s1550_s18 }
 0x228   : > { %p1861_p3 = pnand %p1864_p2, %p2290_p8 }
 0x22a   : > { %2184 = dma.done.wait (!%p1861_p3), %s1551_s5, 2048  }
 0x22b   : > { %2186 = vsyncadd (!%p1861_p3), %s1551_s5, 4294965248  ;;  %s17_s20 = sadd.s32 1, %s2209_s20   ;;  %s3072_s15 = smov %s2193_s16 }
 0x22c   : > { %p14_p5 = scmp.ge.s32.totalorder %s17_s20, 4   ;;  %s3073_s16 = smov %s2197_s17 }
 0x22d   : > { %s3074_s17 = smov %s2296_s28  ;;  %s3075_s18 = smov %s2205_s19 }
 0x22e   : > { %s3076_s19 = smov %s3078_s23  ;;  %16 = sbr.rel (!%p14_p5) target bundleno = 4 (0x4), region = 76 }
 0x235   :  { %1556 = vsyncpa [#allocation3], 1 }
 0x236   :  { %1558 = vsyncpa [#allocation3 + $0x1], 1 }

</bundles_post_ra>
